<compile_context>
chip_gen: v7x
topology: tpu7x:2x2x1
jax: 0.10.0
libtpu: 0.0.40
codegen_flags: <defaults>
</compile_context>

<pallas_src>
import functools
import math

import jax
import jax.numpy as jnp
from jax.experimental import pallas as pl
from jax.experimental.pallas import tpu as pltpu  # noqa: F401  (TPU backend)

_LANES = 128  # lane-dense width used for x, hidden activations, logits, output


# ----------------------------------------------------------------------------
# Kernel: all autoregressive steps unrolled in one body (no grid)
# ----------------------------------------------------------------------------
def _policy_ar_kernel(x0_ref, w1_ref, w2_ref, w3_ref, g_ref, out_ref, *,
                      num_inputs, num_outputs, bucket_size, ac_low):
    x = x0_ref[...]                               # (B, 128): [state | 0-actions | 1 | 0...]
    B = x.shape[0]
    lane = jax.lax.broadcasted_iota(jnp.int32, (B, _LANES), 1)

    acts = jnp.zeros((B, _LANES), jnp.float32)    # actions land in lanes [0, num_outputs)
    logp_sum = jnp.zeros((B, 1), jnp.float32)

    for j in range(num_outputs):                  # static unroll; weights VMEM-resident
        w1 = w1_ref[j]                            # (128, 128), bias folded into a row
        w2 = w2_ref[j]                            # (128, 128)
        w3 = w3_ref[j]                            # (128, 128), padded logit lanes -> -1e30
        g = g_ref[j]                              # (B, 128) Gumbel noise

        # 3-layer MLP (Linear -> ReLU -> Linear -> ReLU -> Linear), bias via 1-lane.
        h1 = jnp.maximum(jnp.dot(x, w1, preferred_element_type=jnp.float32), 0.0)
        h2 = jnp.maximum(jnp.dot(h1, w2, preferred_element_type=jnp.float32), 0.0)
        logits = jnp.dot(h2, w3, preferred_element_type=jnp.float32)    # (B, 128)

        # Categorical sample via Gumbel-max (first maximal index).
        z = logits + g
        zmax = jnp.max(z, axis=-1, keepdims=True)
        idx = jnp.min(jnp.where(z >= zmax, lane, _LANES), axis=-1, keepdims=True)  # (B,1)

        # log-prob of the sampled bucket: log-softmax + one-hot gather.
        lmax = jnp.max(logits, axis=-1, keepdims=True)
        lse = lmax + jnp.log(jnp.sum(jnp.exp(logits - lmax), axis=-1, keepdims=True))
        picked = jnp.sum(jnp.where(lane == idx, logits, 0.0), axis=-1, keepdims=True)
        logp_sum = logp_sum + (picked - lse)

        # undiscretize: bucket center = idx * bucket_size + ac_low + bucket_size/2
        cont = idx.astype(jnp.float32) * bucket_size + ac_low + 0.5 * bucket_size

        acts = acts + jnp.where(lane == j, cont, 0.0)
        x = x + jnp.where(lane == num_inputs + j, cont, 0.0)   # append to AR input

    # Single lane-dense writeback: cols [0, num_outputs) = actions, col num_outputs = logp.
    out_ref[...] = acts + jnp.where(lane == num_outputs, logp_sum, 0.0)


# ----------------------------------------------------------------------------
# Forward pass wrapper
# ----------------------------------------------------------------------------
def _policy_ar_forward_impl(state, w1s, w2s, w3s, gumbels, *,
                            ac_low, ac_high, num_buckets):
    B, num_inputs = state.shape
    num_outputs = w1s.shape[0]
    assert num_inputs + num_outputs + 1 <= _LANES
    assert num_outputs + 1 <= _LANES
    bucket_size = (ac_high - ac_low) / num_buckets
    bias_lane = num_inputs + num_outputs          # constant-1 lane of the kernel input

    x0 = jnp.zeros((B, _LANES), jnp.float32)
    x0 = x0.at[:, :num_inputs].set(state.astype(jnp.float32))
    x0 = x0.at[:, bias_lane].set(1.0)

    kernel = functools.partial(
        _policy_ar_kernel,
        num_inputs=num_inputs, num_outputs=num_outputs,
        bucket_size=float(bucket_size), ac_low=float(ac_low))

    # Gridless call: every input is a whole-array VMEM block (total < 1 MB),
    # one kernel invocation, one HBM writeback.
    out = pl.pallas_call(
        kernel,
        out_shape=jax.ShapeDtypeStruct((B, _LANES), jnp.float32),
    )(x0, w1s, w2s, w3s, gumbels)

    vals = out[:, :num_outputs]       # (B, num_outputs) continuous actions
    log_probs = out[:, num_outputs]   # (B,) summed log-prob
    return vals, log_probs


policy_ar_forward = jax.jit(
    _policy_ar_forward_impl,
    static_argnames=("ac_low", "ac_high", "num_buckets"))


# ----------------------------------------------------------------------------
# Parameter construction (PyTorch-Linear-style uniform init), padded/stacked
# for the kernel with biases folded in.  Also returns the raw per-step params
# for a pure-JAX reference check.
# ----------------------------------------------------------------------------
def init_params(key, num_inputs, num_outputs, hidden_dim, num_buckets):
    assert hidden_dim + 1 <= _LANES and num_buckets <= _LANES
    bias_lane = num_inputs + num_outputs   # constant-1 lane in the kernel input x
    hbias = hidden_dim                     # constant-1 lane inside hidden activations

    def unif(k, shape, fan_in):
        bound = 1.0 / math.sqrt(fan_in)
        return jax.random.uniform(k, shape, jnp.float32, -bound, bound)

    w1_l, w2_l, w3_l, raw = [], [], [], []
    for j in range(num_outputs):
        in_dim = num_inputs + j
        key, k1w, k1b, k2w, k2b, k3w, k3b = jax.random.split(key, 7)
        w1 = unif(k1w, (in_dim, hidden_dim), in_dim)
        b1 = unif(k1b, (hidden_dim,), in_dim)
        w2 = unif(k2w, (hidden_dim, hidden_dim), hidden_dim)
        b2 = unif(k2b, (hidden_dim,), hidden_dim)
        w3 = unif(k3w, (hidden_dim, num_buckets), hidden_dim)
        b3 = unif(k3b, (num_buckets,), hidden_dim)
        raw.append((w1, b1, w2, b2, w3, b3))

        # Layer 1: rows = padded input lanes; bias folded into row `bias_lane`,
        # plus a 1.0 that propagates the bias lane into h1[:, hbias].
        W1 = jnp.zeros((_LANES, _LANES), jnp.float32)
        W1 = W1.at[:in_dim, :hidden_dim].set(w1)
        W1 = W1.at[bias_lane, :hidden_dim].set(b1)
        W1 = W1.at[bias_lane, hbias].set(1.0)

        # Layer 2: bias folded into row `hbias`; bias lane propagated again.
        W2 = jnp.zeros((_LANES, _LANES), jnp.float32)
        W2 = W2.at[:hidden_dim, :hidden_dim].set(w2)
        W2 = W2.at[hbias, :hidden_dim].set(b2)
        W2 = W2.at[hbias, hbias].set(1.0)

        # Layer 3: bias folded into row `hbias`; padded logit lanes get -1e30
        # so softmax / Gumbel-max over the 128-wide logits are exact.
        W3 = jnp.zeros((_LANES, _LANES), jnp.float32)
        W3 = W3.at[:hidden_dim, :num_buckets].set(w3)
        W3 = W3.at[hbias, :num_buckets].set(b3)
        W3 = W3.at[hbias, num_buckets:].set(-1e30)

        w1_l.append(W1); w2_l.append(W2); w3_l.append(W3)

    return jnp.stack(w1_l), jnp.stack(w2_l), jnp.stack(w3_l), raw


# ----------------------------------------------------------------------------
# Pure-JAX reference for log_prob(state, sampled_actions)  (== module.log_prob)
# ----------------------------------------------------------------------------
def reference_log_prob(state, raw_params, actions, ac_low, ac_high, num_buckets):
    bucket_size = (ac_high - ac_low) / num_buckets
    idx = jnp.clip(
        jnp.round((actions - ac_low - 0.5 * bucket_size) / bucket_size),
        0, num_buckets - 1).astype(jnp.int32)
    logp = jnp.zeros((state.shape[0],), jnp.float32)
    for j, (w1, b1, w2, b2, w3, b3) in enumerate(raw_params):
        inp = state if j == 0 else jnp.concatenate([state, actions[:, :j]], axis=-1)
        h1 = jnp.maximum(inp @ w1 + b1, 0.0)
        h2 = jnp.maximum(h1 @ w2 + b2, 0.0)
        logits = h2 @ w3 + b3
        lp = jax.nn.log_softmax(logits, axis=-1)
        logp = logp + jnp.take_along_axis(lp, idx[:, j:j + 1], axis=-1)[:, 0]
    return logp


# ----------------------------------------------------------------------------
if __name__ == "__main__":
    batch = 8
    num_inputs = 16      # state dimension
    num_outputs = 4      # action dimensions (autoregressive steps)
    hidden_dim = 64
    num_buckets = 10
    ac_low, ac_high = -1.0, 1.0

    key = jax.random.PRNGKey(0)
    k_params, k_state, k_gumbel = jax.random.split(key, 3)

    w1s, w2s, w3s, raw_params = init_params(
        k_params, num_inputs, num_outputs, hidden_dim, num_buckets)
    state = jax.random.normal(k_state, (batch, num_inputs), jnp.float32)
    # Host-generated Gumbel noise keeps sampling distribution-equivalent to
    # torch.distributions.Categorical.sample (Gumbel-max trick).
    # TODO(synk): optionally switch to in-kernel pltpu.prng_random_bits noise.
    gumbels = jax.random.gumbel(k_gumbel, (num_outputs, batch, _LANES), jnp.float32)

    vals, log_probs = policy_ar_forward(
        state, w1s, w2s, w3s, gumbels,
        ac_low=ac_low, ac_high=ac_high, num_buckets=num_buckets)
    jax.block_until_ready((vals, log_probs))

    assert vals.shape == (batch, num_outputs)
    assert log_probs.shape == (batch,)

    # Continuous actions must lie at bucket centers inside [ac_low, ac_high].
    bucket_size = (ac_high - ac_low) / num_buckets
    assert bool(jnp.all(vals >= ac_low + 0.49 * bucket_size))
    assert bool(jnp.all(vals <= ac_high - 0.49 * bucket_size))
    assert bool(jnp.all(jnp.isfinite(log_probs)))

    # Cross-check: the summed log-prob of the kernel's own sampled actions must
    # match the pure-JAX (unpadded, explicit-bias) evaluation of the same MLPs.
    ref_lp = reference_log_prob(state, raw_params, vals, ac_low, ac_high, num_buckets)
    assert bool(jnp.allclose(log_probs, ref_lp, atol=1e-2, rtol=1e-2)), (log_probs, ref_lp)

    print("KERNEL_OK")
</pallas_src>

<mosaic_0001>
module attributes {stable_mosaic.version = 11 : i64} {
  func.func @_policy_ar_kernel(%arg0: memref<8x128xf32, #tpu.memory_space<vmem>>, %arg1: memref<4x128x128xf32, #tpu.memory_space<vmem>>, %arg2: memref<4x128x128xf32, #tpu.memory_space<vmem>>, %arg3: memref<4x128x128xf32, #tpu.memory_space<vmem>>, %arg4: memref<4x8x128xf32, #tpu.memory_space<vmem>>, %arg5: memref<8x128xf32, #tpu.memory_space<vmem>>) attributes {dimension_semantics = [], scalar_prefetch = 0 : i64, scratch_operands = 0 : i64, tpu.core_type = #tpu.core_type<tc>} {
    %c0 = arith.constant 0 : index
    %c0_0 = arith.constant 0 : index
    %0 = vector.load %arg0[%c0, %c0_0] : memref<8x128xf32, #tpu.memory_space<vmem>>, vector<8x128xf32>
    %1 = tpu.iota {dimensions = array<i32: 1>} : vector<8x128xi32>
    %cst = arith.constant 0.000000e+00 : f32
    %2 = vector.broadcast %cst : f32 to vector<8x128xf32>
    %cst_1 = arith.constant 0.000000e+00 : f32
    %3 = vector.broadcast %cst_1 : f32 to vector<8x1xf32>
    %c0_2 = arith.constant 0 : index
    %c0_3 = arith.constant 0 : index
    %c0_4 = arith.constant 0 : index
    %4 = vector.load %arg1[%c0_2, %c0_3, %c0_4] : memref<4x128x128xf32, #tpu.memory_space<vmem>>, vector<1x128x128xf32>
    %5 = vector.shape_cast %4 : vector<1x128x128xf32> to vector<128x128xf32>
    %c0_5 = arith.constant 0 : index
    %c0_6 = arith.constant 0 : index
    %c0_7 = arith.constant 0 : index
    %6 = vector.load %arg2[%c0_5, %c0_6, %c0_7] : memref<4x128x128xf32, #tpu.memory_space<vmem>>, vector<1x128x128xf32>
    %7 = vector.shape_cast %6 : vector<1x128x128xf32> to vector<128x128xf32>
    %c0_8 = arith.constant 0 : index
    %c0_9 = arith.constant 0 : index
    %c0_10 = arith.constant 0 : index
    %8 = vector.load %arg3[%c0_8, %c0_9, %c0_10] : memref<4x128x128xf32, #tpu.memory_space<vmem>>, vector<1x128x128xf32>
    %9 = vector.shape_cast %8 : vector<1x128x128xf32> to vector<128x128xf32>
    %c0_11 = arith.constant 0 : index
    %c0_12 = arith.constant 0 : index
    %c0_13 = arith.constant 0 : index
    %10 = vector.load %arg4[%c0_11, %c0_12, %c0_13] : memref<4x8x128xf32, #tpu.memory_space<vmem>>, vector<1x8x128xf32>
    %11 = vector.shape_cast %10 : vector<1x8x128xf32> to vector<8x128xf32>
    %cst_14 = arith.constant dense<0.000000e+00> : vector<8x128xf32>
    %12 = tpu.matmul %0, %5, %cst_14 {dimension_numbers = #tpu.dot_dimension_numbers<[1], [0], [0], [1], [0, 0, 1, 1], [], []>} : vector<8x128xf32>, vector<128x128xf32>, vector<8x128xf32> -> vector<8x128xf32>
    %cst_15 = arith.constant 0.000000e+00 : f32
    %13 = vector.broadcast %cst_15 : f32 to vector<8x128xf32>
    %14 = arith.maximumf %12, %13 : vector<8x128xf32>
    %cst_16 = arith.constant dense<0.000000e+00> : vector<8x128xf32>
    %15 = tpu.matmul %14, %7, %cst_16 {dimension_numbers = #tpu.dot_dimension_numbers<[1], [0], [0], [1], [0, 0, 1, 1], [], []>} : vector<8x128xf32>, vector<128x128xf32>, vector<8x128xf32> -> vector<8x128xf32>
    %cst_17 = arith.constant 0.000000e+00 : f32
    %16 = vector.broadcast %cst_17 : f32 to vector<8x128xf32>
    %17 = arith.maximumf %15, %16 : vector<8x128xf32>
    %cst_18 = arith.constant dense<0.000000e+00> : vector<8x128xf32>
    %18 = tpu.matmul %17, %9, %cst_18 {dimension_numbers = #tpu.dot_dimension_numbers<[1], [0], [0], [1], [0, 0, 1, 1], [], []>} : vector<8x128xf32>, vector<128x128xf32>, vector<8x128xf32> -> vector<8x128xf32>
    %19 = arith.addf %18, %11 : vector<8x128xf32>
    %cst_19 = arith.constant dense<0xFF800000> : vector<8xf32>
    %20 = vector.multi_reduction <maximumf>, %19, %cst_19 [1] : vector<8x128xf32> to vector<8xf32>
    %21 = vector.shape_cast %20 : vector<8xf32> to vector<8x1xf32>
    %22 = vector.broadcast %21 : vector<8x1xf32> to vector<8x128xf32>
    %23 = arith.cmpf oge, %19, %22 : vector<8x128xf32>
    %c128_i32 = arith.constant 128 : i32
    %24 = vector.broadcast %c128_i32 : i32 to vector<8x128xi32>
    %25 = arith.select %23, %1, %24 : vector<8x128xi1>, vector<8x128xi32>
    %cst_20 = arith.constant dense<2147483647> : vector<8xi32>
    %26 = vector.multi_reduction <minsi>, %25, %cst_20 [1] : vector<8x128xi32> to vector<8xi32>
    %27 = vector.shape_cast %26 : vector<8xi32> to vector<8x1xi32>
    %cst_21 = arith.constant dense<0xFF800000> : vector<8xf32>
    %28 = vector.multi_reduction <maximumf>, %18, %cst_21 [1] : vector<8x128xf32> to vector<8xf32>
    %29 = vector.shape_cast %28 : vector<8xf32> to vector<8x1xf32>
    %30 = vector.broadcast %29 : vector<8x1xf32> to vector<8x128xf32>
    %31 = arith.subf %18, %30 : vector<8x128xf32>
    %32 = math.exp %31 : vector<8x128xf32>
    %cst_22 = arith.constant dense<0.000000e+00> : vector<8xf32>
    %33 = vector.multi_reduction <add>, %32, %cst_22 [1] : vector<8x128xf32> to vector<8xf32>
    %34 = vector.shape_cast %33 : vector<8xf32> to vector<8x1xf32>
    %35 = math.log %34 : vector<8x1xf32>
    %36 = arith.addf %29, %35 : vector<8x1xf32>
    %37 = vector.broadcast %27 : vector<8x1xi32> to vector<8x128xi32>
    %38 = arith.cmpi eq, %1, %37 : vector<8x128xi32>
    %cst_23 = arith.constant 0.000000e+00 : f32
    %39 = vector.broadcast %cst_23 : f32 to vector<8x128xf32>
    %40 = arith.select %38, %18, %39 : vector<8x128xi1>, vector<8x128xf32>
    %cst_24 = arith.constant dense<0.000000e+00> : vector<8xf32>
    %41 = vector.multi_reduction <add>, %40, %cst_24 [1] : vector<8x128xf32> to vector<8xf32>
    %42 = vector.shape_cast %41 : vector<8xf32> to vector<8x1xf32>
    %43 = arith.subf %42, %36 : vector<8x1xf32>
    %44 = arith.addf %3, %43 : vector<8x1xf32>
    %45 = arith.sitofp %27 : vector<8x1xi32> to vector<8x1xf32>
    %cst_25 = arith.constant 2.000000e-01 : f32
    %46 = vector.broadcast %cst_25 : f32 to vector<8x1xf32>
    %47 = arith.mulf %45, %46 : vector<8x1xf32>
    %cst_26 = arith.constant -1.000000e+00 : f32
    %48 = vector.broadcast %cst_26 : f32 to vector<8x1xf32>
    %49 = arith.addf %47, %48 : vector<8x1xf32>
    %cst_27 = arith.constant 1.000000e-01 : f32
    %50 = vector.broadcast %cst_27 : f32 to vector<8x1xf32>
    %51 = arith.addf %49, %50 : vector<8x1xf32>
    %c0_i32 = arith.constant 0 : i32
    %52 = vector.broadcast %c0_i32 : i32 to vector<8x128xi32>
    %53 = arith.cmpi eq, %1, %52 : vector<8x128xi32>
    %cst_28 = arith.constant 0.000000e+00 : f32
    %54 = vector.shape_cast %51 : vector<8x1xf32> to vector<8x1xf32>
    %55 = vector.broadcast %54 : vector<8x1xf32> to vector<8x128xf32>
    %56 = vector.broadcast %cst_28 : f32 to vector<8x128xf32>
    %57 = arith.select %53, %55, %56 : vector<8x128xi1>, vector<8x128xf32>
    %58 = arith.addf %2, %57 : vector<8x128xf32>
    %c16_i32 = arith.constant 16 : i32
    %59 = vector.broadcast %c16_i32 : i32 to vector<8x128xi32>
    %60 = arith.cmpi eq, %1, %59 : vector<8x128xi32>
    %cst_29 = arith.constant 0.000000e+00 : f32
    %61 = vector.shape_cast %51 : vector<8x1xf32> to vector<8x1xf32>
    %62 = vector.broadcast %61 : vector<8x1xf32> to vector<8x128xf32>
    %63 = vector.broadcast %cst_29 : f32 to vector<8x128xf32>
    %64 = arith.select %60, %62, %63 : vector<8x128xi1>, vector<8x128xf32>
    %65 = arith.addf %0, %64 : vector<8x128xf32>
    %c1 = arith.constant 1 : index
    %c0_30 = arith.constant 0 : index
    %c0_31 = arith.constant 0 : index
    %66 = vector.load %arg1[%c1, %c0_30, %c0_31] : memref<4x128x128xf32, #tpu.memory_space<vmem>>, vector<1x128x128xf32>
    %67 = vector.shape_cast %66 : vector<1x128x128xf32> to vector<128x128xf32>
    %c1_32 = arith.constant 1 : index
    %c0_33 = arith.constant 0 : index
    %c0_34 = arith.constant 0 : index
    %68 = vector.load %arg2[%c1_32, %c0_33, %c0_34] : memref<4x128x128xf32, #tpu.memory_space<vmem>>, vector<1x128x128xf32>
    %69 = vector.shape_cast %68 : vector<1x128x128xf32> to vector<128x128xf32>
    %c1_35 = arith.constant 1 : index
    %c0_36 = arith.constant 0 : index
    %c0_37 = arith.constant 0 : index
    %70 = vector.load %arg3[%c1_35, %c0_36, %c0_37] : memref<4x128x128xf32, #tpu.memory_space<vmem>>, vector<1x128x128xf32>
    %71 = vector.shape_cast %70 : vector<1x128x128xf32> to vector<128x128xf32>
    %c1_38 = arith.constant 1 : index
    %c0_39 = arith.constant 0 : index
    %c0_40 = arith.constant 0 : index
    %72 = vector.load %arg4[%c1_38, %c0_39, %c0_40] : memref<4x8x128xf32, #tpu.memory_space<vmem>>, vector<1x8x128xf32>
    %73 = vector.shape_cast %72 : vector<1x8x128xf32> to vector<8x128xf32>
    %cst_41 = arith.constant dense<0.000000e+00> : vector<8x128xf32>
    %74 = tpu.matmul %65, %67, %cst_41 {dimension_numbers = #tpu.dot_dimension_numbers<[1], [0], [0], [1], [0, 0, 1, 1], [], []>} : vector<8x128xf32>, vector<128x128xf32>, vector<8x128xf32> -> vector<8x128xf32>
    %cst_42 = arith.constant 0.000000e+00 : f32
    %75 = vector.broadcast %cst_42 : f32 to vector<8x128xf32>
    %76 = arith.maximumf %74, %75 : vector<8x128xf32>
    %cst_43 = arith.constant dense<0.000000e+00> : vector<8x128xf32>
    %77 = tpu.matmul %76, %69, %cst_43 {dimension_numbers = #tpu.dot_dimension_numbers<[1], [0], [0], [1], [0, 0, 1, 1], [], []>} : vector<8x128xf32>, vector<128x128xf32>, vector<8x128xf32> -> vector<8x128xf32>
    %cst_44 = arith.constant 0.000000e+00 : f32
    %78 = vector.broadcast %cst_44 : f32 to vector<8x128xf32>
    %79 = arith.maximumf %77, %78 : vector<8x128xf32>
    %cst_45 = arith.constant dense<0.000000e+00> : vector<8x128xf32>
    %80 = tpu.matmul %79, %71, %cst_45 {dimension_numbers = #tpu.dot_dimension_numbers<[1], [0], [0], [1], [0, 0, 1, 1], [], []>} : vector<8x128xf32>, vector<128x128xf32>, vector<8x128xf32> -> vector<8x128xf32>
    %81 = arith.addf %80, %73 : vector<8x128xf32>
    %cst_46 = arith.constant dense<0xFF800000> : vector<8xf32>
    %82 = vector.multi_reduction <maximumf>, %81, %cst_46 [1] : vector<8x128xf32> to vector<8xf32>
    %83 = vector.shape_cast %82 : vector<8xf32> to vector<8x1xf32>
    %84 = vector.broadcast %83 : vector<8x1xf32> to vector<8x128xf32>
    %85 = arith.cmpf oge, %81, %84 : vector<8x128xf32>
    %c128_i32_47 = arith.constant 128 : i32
    %86 = vector.broadcast %c128_i32_47 : i32 to vector<8x128xi32>
    %87 = arith.select %85, %1, %86 : vector<8x128xi1>, vector<8x128xi32>
    %cst_48 = arith.constant dense<2147483647> : vector<8xi32>
    %88 = vector.multi_reduction <minsi>, %87, %cst_48 [1] : vector<8x128xi32> to vector<8xi32>
    %89 = vector.shape_cast %88 : vector<8xi32> to vector<8x1xi32>
    %cst_49 = arith.constant dense<0xFF800000> : vector<8xf32>
    %90 = vector.multi_reduction <maximumf>, %80, %cst_49 [1] : vector<8x128xf32> to vector<8xf32>
    %91 = vector.shape_cast %90 : vector<8xf32> to vector<8x1xf32>
    %92 = vector.broadcast %91 : vector<8x1xf32> to vector<8x128xf32>
    %93 = arith.subf %80, %92 : vector<8x128xf32>
    %94 = math.exp %93 : vector<8x128xf32>
    %cst_50 = arith.constant dense<0.000000e+00> : vector<8xf32>
    %95 = vector.multi_reduction <add>, %94, %cst_50 [1] : vector<8x128xf32> to vector<8xf32>
    %96 = vector.shape_cast %95 : vector<8xf32> to vector<8x1xf32>
    %97 = math.log %96 : vector<8x1xf32>
    %98 = arith.addf %91, %97 : vector<8x1xf32>
    %99 = vector.broadcast %89 : vector<8x1xi32> to vector<8x128xi32>
    %100 = arith.cmpi eq, %1, %99 : vector<8x128xi32>
    %cst_51 = arith.constant 0.000000e+00 : f32
    %101 = vector.broadcast %cst_51 : f32 to vector<8x128xf32>
    %102 = arith.select %100, %80, %101 : vector<8x128xi1>, vector<8x128xf32>
    %cst_52 = arith.constant dense<0.000000e+00> : vector<8xf32>
    %103 = vector.multi_reduction <add>, %102, %cst_52 [1] : vector<8x128xf32> to vector<8xf32>
    %104 = vector.shape_cast %103 : vector<8xf32> to vector<8x1xf32>
    %105 = arith.subf %104, %98 : vector<8x1xf32>
    %106 = arith.addf %44, %105 : vector<8x1xf32>
    %107 = arith.sitofp %89 : vector<8x1xi32> to vector<8x1xf32>
    %cst_53 = arith.constant 2.000000e-01 : f32
    %108 = vector.broadcast %cst_53 : f32 to vector<8x1xf32>
    %109 = arith.mulf %107, %108 : vector<8x1xf32>
    %cst_54 = arith.constant -1.000000e+00 : f32
    %110 = vector.broadcast %cst_54 : f32 to vector<8x1xf32>
    %111 = arith.addf %109, %110 : vector<8x1xf32>
    %cst_55 = arith.constant 1.000000e-01 : f32
    %112 = vector.broadcast %cst_55 : f32 to vector<8x1xf32>
    %113 = arith.addf %111, %112 : vector<8x1xf32>
    %c1_i32 = arith.constant 1 : i32
    %114 = vector.broadcast %c1_i32 : i32 to vector<8x128xi32>
    %115 = arith.cmpi eq, %1, %114 : vector<8x128xi32>
    %cst_56 = arith.constant 0.000000e+00 : f32
    %116 = vector.shape_cast %113 : vector<8x1xf32> to vector<8x1xf32>
    %117 = vector.broadcast %116 : vector<8x1xf32> to vector<8x128xf32>
    %118 = vector.broadcast %cst_56 : f32 to vector<8x128xf32>
    %119 = arith.select %115, %117, %118 : vector<8x128xi1>, vector<8x128xf32>
    %120 = arith.addf %58, %119 : vector<8x128xf32>
    %c17_i32 = arith.constant 17 : i32
    %121 = vector.broadcast %c17_i32 : i32 to vector<8x128xi32>
    %122 = arith.cmpi eq, %1, %121 : vector<8x128xi32>
    %cst_57 = arith.constant 0.000000e+00 : f32
    %123 = vector.shape_cast %113 : vector<8x1xf32> to vector<8x1xf32>
    %124 = vector.broadcast %123 : vector<8x1xf32> to vector<8x128xf32>
    %125 = vector.broadcast %cst_57 : f32 to vector<8x128xf32>
    %126 = arith.select %122, %124, %125 : vector<8x128xi1>, vector<8x128xf32>
    %127 = arith.addf %65, %126 : vector<8x128xf32>
    %c2 = arith.constant 2 : index
    %c0_58 = arith.constant 0 : index
    %c0_59 = arith.constant 0 : index
    %128 = vector.load %arg1[%c2, %c0_58, %c0_59] : memref<4x128x128xf32, #tpu.memory_space<vmem>>, vector<1x128x128xf32>
    %129 = vector.shape_cast %128 : vector<1x128x128xf32> to vector<128x128xf32>
    %c2_60 = arith.constant 2 : index
    %c0_61 = arith.constant 0 : index
    %c0_62 = arith.constant 0 : index
    %130 = vector.load %arg2[%c2_60, %c0_61, %c0_62] : memref<4x128x128xf32, #tpu.memory_space<vmem>>, vector<1x128x128xf32>
    %131 = vector.shape_cast %130 : vector<1x128x128xf32> to vector<128x128xf32>
    %c2_63 = arith.constant 2 : index
    %c0_64 = arith.constant 0 : index
    %c0_65 = arith.constant 0 : index
    %132 = vector.load %arg3[%c2_63, %c0_64, %c0_65] : memref<4x128x128xf32, #tpu.memory_space<vmem>>, vector<1x128x128xf32>
    %133 = vector.shape_cast %132 : vector<1x128x128xf32> to vector<128x128xf32>
    %c2_66 = arith.constant 2 : index
    %c0_67 = arith.constant 0 : index
    %c0_68 = arith.constant 0 : index
    %134 = vector.load %arg4[%c2_66, %c0_67, %c0_68] : memref<4x8x128xf32, #tpu.memory_space<vmem>>, vector<1x8x128xf32>
    %135 = vector.shape_cast %134 : vector<1x8x128xf32> to vector<8x128xf32>
    %cst_69 = arith.constant dense<0.000000e+00> : vector<8x128xf32>
    %136 = tpu.matmul %127, %129, %cst_69 {dimension_numbers = #tpu.dot_dimension_numbers<[1], [0], [0], [1], [0, 0, 1, 1], [], []>} : vector<8x128xf32>, vector<128x128xf32>, vector<8x128xf32> -> vector<8x128xf32>
    %cst_70 = arith.constant 0.000000e+00 : f32
    %137 = vector.broadcast %cst_70 : f32 to vector<8x128xf32>
    %138 = arith.maximumf %136, %137 : vector<8x128xf32>
    %cst_71 = arith.constant dense<0.000000e+00> : vector<8x128xf32>
    %139 = tpu.matmul %138, %131, %cst_71 {dimension_numbers = #tpu.dot_dimension_numbers<[1], [0], [0], [1], [0, 0, 1, 1], [], []>} : vector<8x128xf32>, vector<128x128xf32>, vector<8x128xf32> -> vector<8x128xf32>
    %cst_72 = arith.constant 0.000000e+00 : f32
    %140 = vector.broadcast %cst_72 : f32 to vector<8x128xf32>
    %141 = arith.maximumf %139, %140 : vector<8x128xf32>
    %cst_73 = arith.constant dense<0.000000e+00> : vector<8x128xf32>
    %142 = tpu.matmul %141, %133, %cst_73 {dimension_numbers = #tpu.dot_dimension_numbers<[1], [0], [0], [1], [0, 0, 1, 1], [], []>} : vector<8x128xf32>, vector<128x128xf32>, vector<8x128xf32> -> vector<8x128xf32>
    %143 = arith.addf %142, %135 : vector<8x128xf32>
    %cst_74 = arith.constant dense<0xFF800000> : vector<8xf32>
    %144 = vector.multi_reduction <maximumf>, %143, %cst_74 [1] : vector<8x128xf32> to vector<8xf32>
    %145 = vector.shape_cast %144 : vector<8xf32> to vector<8x1xf32>
    %146 = vector.broadcast %145 : vector<8x1xf32> to vector<8x128xf32>
    %147 = arith.cmpf oge, %143, %146 : vector<8x128xf32>
    %c128_i32_75 = arith.constant 128 : i32
    %148 = vector.broadcast %c128_i32_75 : i32 to vector<8x128xi32>
    %149 = arith.select %147, %1, %148 : vector<8x128xi1>, vector<8x128xi32>
    %cst_76 = arith.constant dense<2147483647> : vector<8xi32>
    %150 = vector.multi_reduction <minsi>, %149, %cst_76 [1] : vector<8x128xi32> to vector<8xi32>
    %151 = vector.shape_cast %150 : vector<8xi32> to vector<8x1xi32>
    %cst_77 = arith.constant dense<0xFF800000> : vector<8xf32>
    %152 = vector.multi_reduction <maximumf>, %142, %cst_77 [1] : vector<8x128xf32> to vector<8xf32>
    %153 = vector.shape_cast %152 : vector<8xf32> to vector<8x1xf32>
    %154 = vector.broadcast %153 : vector<8x1xf32> to vector<8x128xf32>
    %155 = arith.subf %142, %154 : vector<8x128xf32>
    %156 = math.exp %155 : vector<8x128xf32>
    %cst_78 = arith.constant dense<0.000000e+00> : vector<8xf32>
    %157 = vector.multi_reduction <add>, %156, %cst_78 [1] : vector<8x128xf32> to vector<8xf32>
    %158 = vector.shape_cast %157 : vector<8xf32> to vector<8x1xf32>
    %159 = math.log %158 : vector<8x1xf32>
    %160 = arith.addf %153, %159 : vector<8x1xf32>
    %161 = vector.broadcast %151 : vector<8x1xi32> to vector<8x128xi32>
    %162 = arith.cmpi eq, %1, %161 : vector<8x128xi32>
    %cst_79 = arith.constant 0.000000e+00 : f32
    %163 = vector.broadcast %cst_79 : f32 to vector<8x128xf32>
    %164 = arith.select %162, %142, %163 : vector<8x128xi1>, vector<8x128xf32>
    %cst_80 = arith.constant dense<0.000000e+00> : vector<8xf32>
    %165 = vector.multi_reduction <add>, %164, %cst_80 [1] : vector<8x128xf32> to vector<8xf32>
    %166 = vector.shape_cast %165 : vector<8xf32> to vector<8x1xf32>
    %167 = arith.subf %166, %160 : vector<8x1xf32>
    %168 = arith.addf %106, %167 : vector<8x1xf32>
    %169 = arith.sitofp %151 : vector<8x1xi32> to vector<8x1xf32>
    %cst_81 = arith.constant 2.000000e-01 : f32
    %170 = vector.broadcast %cst_81 : f32 to vector<8x1xf32>
    %171 = arith.mulf %169, %170 : vector<8x1xf32>
    %cst_82 = arith.constant -1.000000e+00 : f32
    %172 = vector.broadcast %cst_82 : f32 to vector<8x1xf32>
    %173 = arith.addf %171, %172 : vector<8x1xf32>
    %cst_83 = arith.constant 1.000000e-01 : f32
    %174 = vector.broadcast %cst_83 : f32 to vector<8x1xf32>
    %175 = arith.addf %173, %174 : vector<8x1xf32>
    %c2_i32 = arith.constant 2 : i32
    %176 = vector.broadcast %c2_i32 : i32 to vector<8x128xi32>
    %177 = arith.cmpi eq, %1, %176 : vector<8x128xi32>
    %cst_84 = arith.constant 0.000000e+00 : f32
    %178 = vector.shape_cast %175 : vector<8x1xf32> to vector<8x1xf32>
    %179 = vector.broadcast %178 : vector<8x1xf32> to vector<8x128xf32>
    %180 = vector.broadcast %cst_84 : f32 to vector<8x128xf32>
    %181 = arith.select %177, %179, %180 : vector<8x128xi1>, vector<8x128xf32>
    %182 = arith.addf %120, %181 : vector<8x128xf32>
    %c18_i32 = arith.constant 18 : i32
    %183 = vector.broadcast %c18_i32 : i32 to vector<8x128xi32>
    %184 = arith.cmpi eq, %1, %183 : vector<8x128xi32>
    %cst_85 = arith.constant 0.000000e+00 : f32
    %185 = vector.shape_cast %175 : vector<8x1xf32> to vector<8x1xf32>
    %186 = vector.broadcast %185 : vector<8x1xf32> to vector<8x128xf32>
    %187 = vector.broadcast %cst_85 : f32 to vector<8x128xf32>
    %188 = arith.select %184, %186, %187 : vector<8x128xi1>, vector<8x128xf32>
    %189 = arith.addf %127, %188 : vector<8x128xf32>
    %c3 = arith.constant 3 : index
    %c0_86 = arith.constant 0 : index
    %c0_87 = arith.constant 0 : index
    %190 = vector.load %arg1[%c3, %c0_86, %c0_87] : memref<4x128x128xf32, #tpu.memory_space<vmem>>, vector<1x128x128xf32>
    %191 = vector.shape_cast %190 : vector<1x128x128xf32> to vector<128x128xf32>
    %c3_88 = arith.constant 3 : index
    %c0_89 = arith.constant 0 : index
    %c0_90 = arith.constant 0 : index
    %192 = vector.load %arg2[%c3_88, %c0_89, %c0_90] : memref<4x128x128xf32, #tpu.memory_space<vmem>>, vector<1x128x128xf32>
    %193 = vector.shape_cast %192 : vector<1x128x128xf32> to vector<128x128xf32>
    %c3_91 = arith.constant 3 : index
    %c0_92 = arith.constant 0 : index
    %c0_93 = arith.constant 0 : index
    %194 = vector.load %arg3[%c3_91, %c0_92, %c0_93] : memref<4x128x128xf32, #tpu.memory_space<vmem>>, vector<1x128x128xf32>
    %195 = vector.shape_cast %194 : vector<1x128x128xf32> to vector<128x128xf32>
    %c3_94 = arith.constant 3 : index
    %c0_95 = arith.constant 0 : index
    %c0_96 = arith.constant 0 : index
    %196 = vector.load %arg4[%c3_94, %c0_95, %c0_96] : memref<4x8x128xf32, #tpu.memory_space<vmem>>, vector<1x8x128xf32>
    %197 = vector.shape_cast %196 : vector<1x8x128xf32> to vector<8x128xf32>
    %cst_97 = arith.constant dense<0.000000e+00> : vector<8x128xf32>
    %198 = tpu.matmul %189, %191, %cst_97 {dimension_numbers = #tpu.dot_dimension_numbers<[1], [0], [0], [1], [0, 0, 1, 1], [], []>} : vector<8x128xf32>, vector<128x128xf32>, vector<8x128xf32> -> vector<8x128xf32>
    %cst_98 = arith.constant 0.000000e+00 : f32
    %199 = vector.broadcast %cst_98 : f32 to vector<8x128xf32>
    %200 = arith.maximumf %198, %199 : vector<8x128xf32>
    %cst_99 = arith.constant dense<0.000000e+00> : vector<8x128xf32>
    %201 = tpu.matmul %200, %193, %cst_99 {dimension_numbers = #tpu.dot_dimension_numbers<[1], [0], [0], [1], [0, 0, 1, 1], [], []>} : vector<8x128xf32>, vector<128x128xf32>, vector<8x128xf32> -> vector<8x128xf32>
    %cst_100 = arith.constant 0.000000e+00 : f32
    %202 = vector.broadcast %cst_100 : f32 to vector<8x128xf32>
    %203 = arith.maximumf %201, %202 : vector<8x128xf32>
    %cst_101 = arith.constant dense<0.000000e+00> : vector<8x128xf32>
    %204 = tpu.matmul %203, %195, %cst_101 {dimension_numbers = #tpu.dot_dimension_numbers<[1], [0], [0], [1], [0, 0, 1, 1], [], []>} : vector<8x128xf32>, vector<128x128xf32>, vector<8x128xf32> -> vector<8x128xf32>
    %205 = arith.addf %204, %197 : vector<8x128xf32>
    %cst_102 = arith.constant dense<0xFF800000> : vector<8xf32>
    %206 = vector.multi_reduction <maximumf>, %205, %cst_102 [1] : vector<8x128xf32> to vector<8xf32>
    %207 = vector.shape_cast %206 : vector<8xf32> to vector<8x1xf32>
    %208 = vector.broadcast %207 : vector<8x1xf32> to vector<8x128xf32>
    %209 = arith.cmpf oge, %205, %208 : vector<8x128xf32>
    %c128_i32_103 = arith.constant 128 : i32
    %210 = vector.broadcast %c128_i32_103 : i32 to vector<8x128xi32>
    %211 = arith.select %209, %1, %210 : vector<8x128xi1>, vector<8x128xi32>
    %cst_104 = arith.constant dense<2147483647> : vector<8xi32>
    %212 = vector.multi_reduction <minsi>, %211, %cst_104 [1] : vector<8x128xi32> to vector<8xi32>
    %213 = vector.shape_cast %212 : vector<8xi32> to vector<8x1xi32>
    %cst_105 = arith.constant dense<0xFF800000> : vector<8xf32>
    %214 = vector.multi_reduction <maximumf>, %204, %cst_105 [1] : vector<8x128xf32> to vector<8xf32>
    %215 = vector.shape_cast %214 : vector<8xf32> to vector<8x1xf32>
    %216 = vector.broadcast %215 : vector<8x1xf32> to vector<8x128xf32>
    %217 = arith.subf %204, %216 : vector<8x128xf32>
    %218 = math.exp %217 : vector<8x128xf32>
    %cst_106 = arith.constant dense<0.000000e+00> : vector<8xf32>
    %219 = vector.multi_reduction <add>, %218, %cst_106 [1] : vector<8x128xf32> to vector<8xf32>
    %220 = vector.shape_cast %219 : vector<8xf32> to vector<8x1xf32>
    %221 = math.log %220 : vector<8x1xf32>
    %222 = arith.addf %215, %221 : vector<8x1xf32>
    %223 = vector.broadcast %213 : vector<8x1xi32> to vector<8x128xi32>
    %224 = arith.cmpi eq, %1, %223 : vector<8x128xi32>
    %cst_107 = arith.constant 0.000000e+00 : f32
    %225 = vector.broadcast %cst_107 : f32 to vector<8x128xf32>
    %226 = arith.select %224, %204, %225 : vector<8x128xi1>, vector<8x128xf32>
    %cst_108 = arith.constant dense<0.000000e+00> : vector<8xf32>
    %227 = vector.multi_reduction <add>, %226, %cst_108 [1] : vector<8x128xf32> to vector<8xf32>
    %228 = vector.shape_cast %227 : vector<8xf32> to vector<8x1xf32>
    %229 = arith.subf %228, %222 : vector<8x1xf32>
    %230 = arith.addf %168, %229 : vector<8x1xf32>
    %231 = arith.sitofp %213 : vector<8x1xi32> to vector<8x1xf32>
    %cst_109 = arith.constant 2.000000e-01 : f32
    %232 = vector.broadcast %cst_109 : f32 to vector<8x1xf32>
    %233 = arith.mulf %231, %232 : vector<8x1xf32>
    %cst_110 = arith.constant -1.000000e+00 : f32
    %234 = vector.broadcast %cst_110 : f32 to vector<8x1xf32>
    %235 = arith.addf %233, %234 : vector<8x1xf32>
    %cst_111 = arith.constant 1.000000e-01 : f32
    %236 = vector.broadcast %cst_111 : f32 to vector<8x1xf32>
    %237 = arith.addf %235, %236 : vector<8x1xf32>
    %c3_i32 = arith.constant 3 : i32
    %238 = vector.broadcast %c3_i32 : i32 to vector<8x128xi32>
    %239 = arith.cmpi eq, %1, %238 : vector<8x128xi32>
    %cst_112 = arith.constant 0.000000e+00 : f32
    %240 = vector.shape_cast %237 : vector<8x1xf32> to vector<8x1xf32>
    %241 = vector.broadcast %240 : vector<8x1xf32> to vector<8x128xf32>
    %242 = vector.broadcast %cst_112 : f32 to vector<8x128xf32>
    %243 = arith.select %239, %241, %242 : vector<8x128xi1>, vector<8x128xf32>
    %244 = arith.addf %182, %243 : vector<8x128xf32>
    %c4_i32 = arith.constant 4 : i32
    %245 = vector.broadcast %c4_i32 : i32 to vector<8x128xi32>
    %246 = arith.cmpi eq, %1, %245 : vector<8x128xi32>
    %cst_113 = arith.constant 0.000000e+00 : f32
    %247 = vector.shape_cast %230 : vector<8x1xf32> to vector<8x1xf32>
    %248 = vector.broadcast %247 : vector<8x1xf32> to vector<8x128xf32>
    %249 = vector.broadcast %cst_113 : f32 to vector<8x128xf32>
    %250 = arith.select %246, %248, %249 : vector<8x128xi1>, vector<8x128xf32>
    %251 = arith.addf %244, %250 : vector<8x128xf32>
    %c0_114 = arith.constant 0 : index
    %c0_115 = arith.constant 0 : index
    %252 = vector.load %arg5[%c0_114, %c0_115] : memref<8x128xf32, #tpu.memory_space<vmem>>, vector<8x128xf32>
    tpu.vector_store %arg5[%c0_114, %c0_115], %251 {strides = array<i32>} : memref<8x128xf32, #tpu.memory_space<vmem>>, vector<8x128xf32>,
    return
  }
}

</mosaic_0001>

<bundles_post_ra>
// kernel: _policy_ar_forward_impl.1
= control target key start
LH: loop header
LB: loop body
LE: loop exit
PB: predicated region body
PF: predicated region fallthrough
CT: control target
= control target key end

     0   :  { %10 = vsyncpa [#allocation3], 0  ;;  %s2619_s0 = inlined_call_operand.vmem [shape: f32[8,128], index: 0, kind: input, shape index: {}]   ;;  %s2620_s1 = inlined_call_operand.hbm [shape: f32[4,128,128], index: 1, kind: input, shape index: {}]   ;;  %s2621_s2 = inlined_call_operand.hbm [shape: f32[4,128,128], index: 2, kind: input, shape index: {}]   ;;  %s2622_s3 = inlined_call_operand.hbm [shape: f32[4,128,128], index: 3, kind: input, shape index: {}]   ;;  %s2623_s4 = inlined_call_operand.vmem [shape: f32[4,8,128], index: 4, kind: input, shape index: {}]   ;;  %s2624_s5 = inlined_call_operand.vmem [shape: f32[8,128], index: 5, kind: output, shape index: {}]  }
   0x1   :  { %11 = vsyncpa [#allocation5], 0  ;;  %s2316_s18 = smov [#allocation4]   ;;  %s2317_s20 = smov [#allocation2]  }
   0x2   :  { %s31_s19 = sshll.u32 %s2316_s18, 4  ;;  %s19_s21 = sshll.u32 %s2317_s20, 4  ;;  %s32_s19 = int_to_ptr.vmem [resolvable:$true] %s31_s19  ;;  %s2354_s21 = int_to_ptr.vmem [resolvable:$true] %s19_s21 }
   0x3   :  { %s2246_s24 = scalar_lea.hbm %s2621_s2, 8192 }
   0x4   :  { %p2247_p0 = scmp.ne.s32.totalorder %s2621_s2, %s2246_s24  ;;  %p2250_p1 = scmp.lt.u32.totalorder %s2246_s24, %s2621_s2 }
   0x6   :  { %p2252_p2 = pnand %p2250_p1, %p2247_p0 }
   0x8   :  { %2255 = shalt.err (!%p2252_p2)
}
   0x9   :  { %s2256_s29 = scalar_lea.vmem %s32_s19, 8192  ;;  %p2261_p4 = scmp.lt.s32.totalorder %s32_s19, %s32_s19 }
   0xa   :  { %p2257_p3 = scmp.ne.s32.totalorder %s32_s19, %s2256_s29  ;;  %p2262_p5 = scmp.lt.s32.totalorder %s2256_s29, %s2256_s29 }
   0xc   :  { %p2263_p6 = por %p2262_p5, %p2261_p4 }
   0xe   :  { %p2264_p7 = pnand %p2263_p6, %p2257_p3 }
  0x10   :  { %2267 = shalt.err (!%p2264_p7)
}
  0x11   :  { %s2318_s30 = smov 128   ;;  %s2319_s6 = smov 8  }
  0x12   :  { %37 = dma.hbm_to_vmem [thread:$0]  %s2621_s2, 8192, %s32_s19, [#allocation5], %s2318_s30, %s2318_s30, %s2319_s6  }
  0x13   :  { %s2268_s11 = scalar_lea.hbm %s2620_s1, 8192 }
  0x14   :  { %p2269_p8 = scmp.ne.s32.totalorder %s2620_s1, %s2268_s11  ;;  %p2272_p9 = scmp.lt.u32.totalorder %s2268_s11, %s2620_s1 }
  0x16   :  { %p2274_p10 = pnand %p2272_p9, %p2269_p8 }
  0x18   :  { %2277 = shalt.err (!%p2274_p10)
}
  0x19   :  { %s2278_s16 = scalar_lea.vmem %s2354_s21, 8192  ;;  %p2283_p12 = scmp.lt.s32.totalorder %s2354_s21, %s2354_s21 }
  0x1a   :  { %p2279_p11 = scmp.ne.s32.totalorder %s2354_s21, %s2278_s16  ;;  %p2284_p13 = scmp.lt.s32.totalorder %s2278_s16, %s2278_s16 }
  0x1c   :  { %p2285_p0 = por %p2284_p13, %p2283_p12 }
  0x1e   :  { %p2286_p1 = pnand %p2285_p0, %p2279_p11 }
  0x20   :  { %2289 = shalt.err (!%p2286_p1)
}
  0x21   :  { %25 = dma.hbm_to_vmem [thread:$0]  %s2620_s1, 8192, %s2354_s21, [#allocation3], %s2318_s30, %s2318_s30, %s2319_s6  }
  0x22   :  { %s2320_s18 = smov [#allocation6]   ;;  %s2290_s23 = scalar_lea.hbm %s2622_s3, 8192 }
  0x23   :  { %s43_s19 = sshll.u32 %s2320_s18, 4  ;;  %p2291_p2 = scmp.ne.s32.totalorder %s2622_s3, %s2290_s23  ;;  %s44_s19 = int_to_ptr.vmem [resolvable:$true] %s43_s19 }
  0x24   :  { %p2294_p3 = scmp.lt.u32.totalorder %s2290_s23, %s2622_s3 }
  0x26   :  { %p2296_p4 = pnand %p2294_p3, %p2291_p2 }
  0x28   :  { %2299 = shalt.err (!%p2296_p4)
}
  0x29   :  { %s2300_s28 = scalar_lea.vmem %s44_s19, 8192  ;;  %p2305_p6 = scmp.lt.s32.totalorder %s44_s19, %s44_s19 }
  0x2a   :  { %p2301_p5 = scmp.ne.s32.totalorder %s44_s19, %s2300_s28  ;;  %p2306_p7 = scmp.lt.s32.totalorder %s2300_s28, %s2300_s28 }
  0x2c   :  { %p2307_p8 = por %p2306_p7, %p2305_p6 }
  0x2e   :  { %p2308_p9 = pnand %p2307_p8, %p2301_p5 }
  0x30   :  { %2311 = shalt.err (!%p2308_p9)
}
  0x31   :  { %49 = dma.hbm_to_vmem [thread:$0]  %s2622_s3, 8192, %s44_s19, [#allocation5], %s2318_s30, %s2318_s30, %s2319_s6  }
  0x32   :  { %2312 = dma.done.wait [#allocation3], 8192  }
  0x33   :  { %2313 = vsyncadd [#allocation3], 4294959104 }
  0x34   :  { %2314 = dma.done.wait [#allocation5], 16384  }
  0x35   :  { %2315 = vsyncadd [#allocation5], 4294950912  ;;  %v2321_v0 = vmov 0.0|0.0   ;;  %vm2322_vm0 = vmmov 0   ;;  %v2323_v1 = vmov 0.0   ;;  %v64_v2 = vld [vmem:[#allocation2] sm:$0xff] }
  0x36   :  { %1934 = vmatprep.subr.bf16.mxu0 %v2321_v0  ;;  %1546 = vmatprep.mubr.msk.f32.mxu0 %vm2322_vm0, %v2323_v1  ;;  %v65_v3 = vld [vmem:[#allocation2 + $0x8] sm:$0xff]  ;;  %v66_v4 = vld [vmem:[#allocation2 + $0x10] sm:$0xff]  ;;  %v67_v6 = vld [vmem:[#allocation2 + $0x18] sm:$0xff] }
  0x37   :  { %1958 = vmatprep.subr.bf16.mxu1 %v2321_v0  ;;  %1581 = vmatprep.mubr.msk.f32.mxu1 %vm2322_vm0, %v2323_v1  ;;  %v1935_v5 = vpack.c.bf16 %v65_v3, %v64_v2  ;;  %v1938_v7 = vpack.c.bf16 %v67_v6, %v66_v4  ;;  %v68_v8 = vld [vmem:[#allocation2 + $0x20] sm:$0xff]  ;;  %v69_v9 = vld [vmem:[#allocation2 + $0x28] sm:$0xff]  ;;  %v82_v12 = vld [vmem:[#allocation4 + $0x10] sm:$0xff] }
  0x38   :  { %v80_v10 = vld [vmem:[#allocation4] sm:$0xff]  ;;  %v81_v11 = vld [vmem:[#allocation4 + $0x8] sm:$0xff]  ;;  %v83_v13 = vld [vmem:[#allocation4 + $0x18] sm:$0xff]  ;;  %v1941_v14 = vpack.c.bf16 %v69_v9, %v68_v8 }
  0x39   :  { %1936 = vmatpush3.bf16.msra.mxu0 %v1935_v5  ;;  %v1959_v15 = vpack.c.bf16 %v81_v11, %v80_v10  ;;  %v70_v16 = vld [vmem:[#allocation2 + $0x30] sm:$0xff]  ;;  %v71_v17 = vld [vmem:[#allocation2 + $0x38] sm:$0xff]  ;;  %v1962_v18 = vpack.c.bf16 %v83_v13, %v82_v12  ;;  %v84_v19 = vld [vmem:[#allocation4 + $0x20] sm:$0xff] }
  0x3a   :  { %1937 = vmatprep.subr.bf16.mxu0 %v2321_v0  ;;  %v85_v20 = vld [vmem:[#allocation4 + $0x28] sm:$0xff]  ;;  %v1944_v21 = vpack.c.bf16 %v71_v17, %v70_v16  ;;  %v72_v22 = vld [vmem:[#allocation2 + $0x40] sm:$0xff]  ;;  %v86_v25 = vld [vmem:[#allocation4 + $0x30] sm:$0xff] }
  0x3b   :  { %1960 = vmatpush3.bf16.msra.mxu1 %v1959_v15  ;;  %v73_v23 = vld [vmem:[#allocation2 + $0x48] sm:$0xff]  ;;  %v1965_v24 = vpack.c.bf16 %v85_v20, %v84_v19  ;;  %v87_v26 = vld [vmem:[#allocation4 + $0x38] sm:$0xff]  ;;  %v74_v28 = vld [vmem:[#allocation2 + $0x50] sm:$0xff] }
  0x3c   :  { %1961 = vmatprep.subr.bf16.mxu1 %v2321_v0  ;;  %v1947_v27 = vpack.c.bf16 %v73_v23, %v72_v22  ;;  %v75_v29 = vld [vmem:[#allocation2 + $0x58] sm:$0xff]  ;;  %v1968_v30 = vpack.c.bf16 %v87_v26, %v86_v25  ;;  %v88_v31 = vld [vmem:[#allocation4 + $0x40] sm:$0xff]  ;;  %v89_v32 = vld [vmem:[#allocation4 + $0x48] sm:$0xff]  ;;  %v62_v23 = vlaneseq }
  0x3d   :  { %1939 = vmatpush3.bf16.msra.mxu0 %v1938_v7  ;;  %v1950_v33 = vpack.c.bf16 %v75_v29, %v74_v28  ;;  %v76_v34 = vld [vmem:[#allocation2 + $0x60] sm:$0xff]  ;;  %v77_v35 = vld [vmem:[#allocation2 + $0x68] sm:$0xff]  ;;  %v1971_v36 = vpack.c.bf16 %v89_v32, %v88_v31  ;;  %v90_v37 = vld [vmem:[#allocation4 + $0x50] sm:$0xff] }
  0x3e   :  { %1940 = vmatprep.subr.bf16.mxu0 %v2321_v0  ;;  %v91_v38 = vld [vmem:[#allocation4 + $0x58] sm:$0xff]  ;;  %v1953_v39 = vpack.c.bf16 %v77_v35, %v76_v34  ;;  %v78_v40 = vld [vmem:[#allocation2 + $0x70] sm:$0xff]  ;;  %v92_v43 = vld [vmem:[#allocation4 + $0x60] sm:$0xff] }
  0x3f   :  { %1963 = vmatpush3.bf16.msra.mxu1 %v1962_v18  ;;  %v79_v41 = vld [vmem:[#allocation2 + $0x78] sm:$0xff]  ;;  %v1974_v42 = vpack.c.bf16 %v91_v38, %v90_v37  ;;  %v93_v44 = vld [vmem:[#allocation4 + $0x68] sm:$0xff]  ;;  %v2428_v47 = vld [vmem:[%s2619_s0] sm:$0xff] }
  0x40   :  { %1964 = vmatprep.subr.bf16.mxu1 %v2321_v0  ;;  %v1956_v45 = vpack.c.bf16 %v79_v41, %v78_v40  ;;  %v1977_v46 = vpack.c.bf16 %v93_v44, %v92_v43  ;;  %v94_v48 = vld [vmem:[#allocation4 + $0x70] sm:$0xff]  ;;  %v95_v49 = vld [vmem:[#allocation4 + $0x78] sm:$0xff]  ;;  %v96_v51 = vld [vmem:[#allocation6] sm:$0xff] }
  0x41   :  { %1942 = vmatpush3.bf16.msra.mxu0 %v1941_v14  ;;  %v1980_v50 = vpack.c.bf16 %v95_v49, %v94_v48  ;;  %v97_v52 = vld [vmem:[#allocation6 + $0x8] sm:$0xff]  ;;  %v98_v53 = vld [vmem:[#allocation6 + $0x10] sm:$0xff]  ;;  %v99_v55 = vld [vmem:[#allocation6 + $0x18] sm:$0xff] }
  0x42   :  { %1943 = vmatprep.subr.bf16.mxu0 %v2321_v0  ;;  %v1983_v54 = vpack.c.bf16 %v97_v52, %v96_v51  ;;  %v1986_v56 = vpack.c.bf16 %v99_v55, %v98_v53  ;;  %v100_v57 = vld [vmem:[#allocation6 + $0x20] sm:$0xff]  ;;  %v101_v58 = vld [vmem:[#allocation6 + $0x28] sm:$0xff]  ;;  %v102_v60 = vld [vmem:[#allocation6 + $0x30] sm:$0xff] }
  0x43   :  { %1966 = vmatpush3.bf16.msra.mxu1 %v1965_v24  ;;  %v1989_v59 = vpack.c.bf16 %v101_v58, %v100_v57  ;;  %v103_v61 = vld [vmem:[#allocation6 + $0x38] sm:$0xff]  ;;  %v104_v63 = vld [vmem:[#allocation6 + $0x40] sm:$0xff]  ;;  %v105_v2 = vld [vmem:[#allocation6 + $0x48] sm:$0xff]  ;;  %v2454_v24 = vand.u32 127, %v62_v23 }
  0x44   :  { %1967 = vmatprep.subr.bf16.mxu1 %v2321_v0  ;;  %v1992_v62 = vpack.c.bf16 %v103_v61, %v102_v60  ;;  %v1995_v3 = vpack.c.bf16 %v105_v2, %v104_v63  ;;  %v106_v4 = vld [vmem:[#allocation6 + $0x50] sm:$0xff]  ;;  %v107_v5 = vld [vmem:[#allocation6 + $0x58] sm:$0xff]  ;;  %v108_v7 = vld [vmem:[#allocation6 + $0x60] sm:$0xff] }
  0x45   :  { %1945 = vmatpush3.bf16.msra.mxu0 %v1944_v21  ;;  %v1998_v6 = vpack.c.bf16 %v107_v5, %v106_v4  ;;  %v109_v8 = vld [vmem:[#allocation6 + $0x68] sm:$0xff]  ;;  %v110_v13 = vld [vmem:[#allocation6 + $0x70] sm:$0xff]  ;;  %v111_v14 = vld [vmem:[#allocation6 + $0x78] sm:$0xff]  ;;  %vm367_vm4 = vcmp.eq.s32.totalorder %v2454_v24, 16  ;;  %vm364_vm8 = vcmp.eq.s32.totalorder %v2454_v24, 0  ;;  %vm674_vm9 = vcmp.eq.s32.totalorder %v2454_v24, 1 }
  0x46   :  { %1946 = vmatprep.subr.bf16.mxu0 %v2321_v0  ;;  %v2001_v9 = vpack.c.bf16 %v109_v8, %v108_v7  ;;  %v2004_v15 = vpack.c.bf16 %v111_v14, %v110_v13  ;;  %v112_v19 = vld [vmem:[%s2623_s4] sm:$0xff]  ;;  %v373_v31 = vld [vmem:[#allocation2 + $0x90] sm:$0xff]  ;;  %v384_v53 = vld [vmem:[#allocation2 + $0xe8] sm:$0xff]  ;;  %vm677_vm10 = vcmp.eq.s32.totalorder %v2454_v24, 17  ;;  %vm984_vm14 = vcmp.eq.s32.totalorder %v2454_v24, 2 }
  0x47   :  { %1969 = vmatpush3.bf16.msra.mxu1 %v1968_v30  ;;  %v371_v29 = vld [vmem:[#allocation2 + $0x80] sm:$0xff]  ;;  %v372_v30 = vld [vmem:[#allocation2 + $0x88] sm:$0xff]  ;;  %v377_v38 = vld [vmem:[#allocation2 + $0xb0] sm:$0xff]  ;;  %vm987_vm15 = vcmp.eq.s32.totalorder %v2454_v24, 18 }
  0x48   :  { %1970 = vmatprep.subr.bf16.mxu1 %v2321_v0  ;;  %v2007_v32 = vpack.c.bf16 %v372_v30, %v371_v29  ;;  %v375_v35 = vld [vmem:[#allocation2 + $0xa0] sm:$0xff]  ;;  %v381_v49 = vld [vmem:[#allocation2 + $0xd0] sm:$0xff] }
  0x49   :  { %1948 = vmatpush3.bf16.msra.mxu0 %v1947_v27  ;;  %v383_v52 = vld [vmem:[#allocation2 + $0xe0] sm:$0xff]  ;;  %v385_v55 = vld [vmem:[#allocation2 + $0xf0] sm:$0xff] }
  0x4a   :  { %1949 = vmatprep.subr.bf16.mxu0 %v2321_v0  ;;  %v388_v58 = vld [vmem:[#allocation4 + $0x80] sm:$0xff]  ;;  %v390_v60 = vld [vmem:[#allocation4 + $0x90] sm:$0xff] }
  0x4b   :  { %1972 = vmatpush3.bf16.msra.mxu1 %v1971_v36  ;;  %v376_v36 = vld [vmem:[#allocation2 + $0xa8] sm:$0xff]  ;;  %v392_v2 = vld [vmem:[#allocation4 + $0xa0] sm:$0xff]  ;;  %v394_v5 = vld [vmem:[#allocation4 + $0xb0] sm:$0xff] }
  0x4c   :  { %1973 = vmatprep.subr.bf16.mxu1 %v2321_v0  ;;  %v2013_v37 = vpack.c.bf16 %v376_v36, %v375_v35  ;;  %v396_v8 = vld [vmem:[#allocation4 + $0xc0] sm:$0xff]  ;;  %v406_v35 = vld [vmem:[#allocation6 + $0x88] sm:$0xff]  ;;  %v407_v36 = vld [vmem:[#allocation6 + $0x90] sm:$0xff] }
  0x4d   :  { %1951 = vmatpush3.bf16.msra.mxu0 %v1950_v33  ;;  %v374_v33 = vld [vmem:[#allocation2 + $0x98] sm:$0xff]  ;;  %v400_v14 = vld [vmem:[#allocation4 + $0xe0] sm:$0xff] }
  0x4e   :  { %1952 = vmatprep.subr.bf16.mxu0 %v2321_v0  ;;  %v2010_v34 = vpack.c.bf16 %v374_v33, %v373_v31  ;;  %v402_v31 = vld [vmem:[#allocation4 + $0xf0] sm:$0xff] }
  0x4f   :  { %1975 = vmatpush3.bf16.msra.mxu1 %v1974_v42 }
  0x50   :  { %1976 = vmatprep.subr.bf16.mxu1 %v2321_v0 }
  0x51   :  { %1954 = vmatpush3.bf16.msra.mxu0 %v1953_v39  ;;  %v378_v39 = vld [vmem:[#allocation2 + $0xb8] sm:$0xff] }
  0x52   :  { %1955 = vmatprep.subr.bf16.mxu0 %v2321_v0  ;;  %v2016_v40 = vpack.c.bf16 %v378_v39, %v377_v38  ;;  %v408_v38 = vld [vmem:[#allocation6 + $0x98] sm:$0xff] }
  0x53   :  { %1978 = vmatpush3.bf16.msra.mxu1 %v1977_v46  ;;  %v380_v46 = vld [vmem:[#allocation2 + $0xc8] sm:$0xff]  ;;  %v2058_v39 = vpack.c.bf16 %v408_v38, %v407_v36 }
  0x54   :  { %1979 = vmatprep.subr.bf16.mxu1 %v2321_v0  ;;  %v694_v38 = vld [vmem:[#allocation2 + $0x168] sm:$0xff] }
  0x55   :  { %1957 = vmatpush3.bf16.msra.mxu0 %v1956_v45  ;;  %v379_v45 = vld [vmem:[#allocation2 + $0xc0] sm:$0xff] }
  0x56   :  { %1982 = vmatprep.subr.bf16.mxu0 %v2321_v0  ;;  %v2019_v48 = vpack.c.bf16 %v380_v46, %v379_v45  ;;  %v413_v45 = vld [vmem:[#allocation6 + $0xc0] sm:$0xff]  ;;  %v414_v46 = vld [vmem:[#allocation6 + $0xc8] sm:$0xff] }
  0x57   :  { %1981 = vmatpush3.bf16.msra.mxu1 %v1980_v50  ;;  %v382_v50 = vld [vmem:[#allocation2 + $0xd8] sm:$0xff] }
  0x58   :  { %1547 = vmatmul.mubr.f32.vlgmr.msra.gmra.mrb[0].mxu0 %v2428_v47  ;;  %2006 = vmatprep.subr.bf16.mxu1 %v2321_v0  ;;  %v2022_v51 = vpack.c.bf16 %v382_v50, %v381_v49  ;;  %v415_v49 = vld [vmem:[#allocation6 + $0xd0] sm:$0xff]  ;;  %v416_v50 = vld [vmem:[#allocation6 + $0xd8] sm:$0xff] }
  0x59   :  { %1616 = vmatprep.mubr.msk.f32.mxu0 %vm2322_vm0, %v2323_v1  ;;  %1984 = vmatpush3.bf16.msra.mxu0 %v1983_v54  ;;  %v2025_v54 = vpack.c.bf16 %v384_v53, %v383_v52  ;;  %v417_v52 = vld [vmem:[#allocation6 + $0xe0] sm:$0xff]  ;;  %v418_v53 = vld [vmem:[#allocation6 + $0xe8] sm:$0xff] }
  0x5a   :  { %1985 = vmatprep.subr.bf16.mxu0 %v2321_v0 }
  0x5d   :  { %1987 = vmatpush3.bf16.msra.mxu0 %v1986_v56  ;;  %v386_v56 = vld [vmem:[#allocation2 + $0xf8] sm:$0xff] }
  0x5e   :  { %1988 = vmatprep.subr.bf16.mxu0 %v2321_v0  ;;  %v2028_v57 = vpack.c.bf16 %v386_v56, %v385_v55 }
  0x61   :  { %1990 = vmatpush3.bf16.msra.mxu0 %v1989_v59  ;;  %v389_v59 = vld [vmem:[#allocation4 + $0x88] sm:$0xff] }
  0x62   :  { %1991 = vmatprep.subr.bf16.mxu0 %v2321_v0  ;;  %v2031_v61 = vpack.c.bf16 %v389_v59, %v388_v58  ;;  %v419_v58 = vld [vmem:[#allocation6 + $0xf0] sm:$0xff]  ;;  %v420_v59 = vld [vmem:[#allocation6 + $0xf8] sm:$0xff] }
  0x65   :  { %1993 = vmatpush3.bf16.msra.mxu0 %v1992_v62  ;;  %v391_v62 = vld [vmem:[#allocation4 + $0x98] sm:$0xff] }
  0x66   :  { %1994 = vmatprep.subr.bf16.mxu0 %v2321_v0  ;;  %v2034_v63 = vpack.c.bf16 %v391_v62, %v390_v60  ;;  %v2076_v60 = vpack.c.bf16 %v420_v59, %v419_v58  ;;  %v708_v58 = vld [vmem:[#allocation4 + $0x150] sm:$0xff]  ;;  %v709_v59 = vld [vmem:[#allocation4 + $0x158] sm:$0xff] }
  0x69   :  { %1996 = vmatpush3.bf16.msra.mxu0 %v1995_v3  ;;  %v393_v3 = vld [vmem:[#allocation4 + $0xa8] sm:$0xff] }
  0x6a   :  { %1997 = vmatprep.subr.bf16.mxu0 %v2321_v0  ;;  %v2037_v4 = vpack.c.bf16 %v393_v3, %v392_v2  ;;  %v1307_v2 = vld [vmem:[%s2623_s4 + $0x8] sm:$0xff] }
  0x6d   :  { %1999 = vmatpush3.bf16.msra.mxu0 %v1998_v6  ;;  %v395_v6 = vld [vmem:[#allocation4 + $0xb8] sm:$0xff] }
  0x6e   :  { %2000 = vmatprep.subr.bf16.mxu0 %v2321_v0  ;;  %v2040_v7 = vpack.c.bf16 %v395_v6, %v394_v5 }
  0x71   :  { %2002 = vmatpush3.bf16.msra.mxu0 %v2001_v9  ;;  %v397_v9 = vld [vmem:[#allocation4 + $0xc8] sm:$0xff] }
  0x72   :  { %2003 = vmatprep.subr.bf16.mxu0 %v2321_v0 }
  0x75   :  { %2005 = vmatpush3.bf16.msra.mxu0 %v2004_v15  ;;  %v401_v15 = vld [vmem:[#allocation4 + $0xe8] sm:$0xff] }
  0x76   :  { %2030 = vmatprep.subr.bf16.mxu0 %v2321_v0 }
 0x12b   :  { %v179_v10 = vpop.f32.mrb[0].mxu0 }
 0x12c   :  { %v183_v11 = vmax.f32 %v179_v10, 0.0  ;;  %v1548_v12 = vpop.f32.mrb[1].mxu0  ;;  %v2043_v10 = vpack.c.bf16 %v397_v9, %v396_v8 }
 0x12d   :  { %v399_v12 = vld [vmem:[#allocation4 + $0xd8] sm:$0xff] }
 0x12e   :  { %1582 = vmatmul.mubr.f32.vlgmr.msra.gmra.mrb[0].mxu1 %v183_v11  ;;  %v398_v11 = vld [vmem:[#allocation4 + $0xd0] sm:$0xff] }
 0x12f   :  { %1651 = vmatprep.mubr.msk.f32.mxu1 %vm2322_vm0, %v2323_v1  ;;  %2008 = vmatpush3.bf16.msra.mxu1 %v2007_v32  ;;  %v2046_v13 = vpack.c.bf16 %v399_v12, %v398_v11  ;;  %v403_v32 = vld [vmem:[#allocation4 + $0xf8] sm:$0xff]  ;;  %v682_v11 = vld [vmem:[#allocation2 + $0x108] sm:$0xff]  ;;  %v683_v12 = vld [vmem:[#allocation2 + $0x110] sm:$0xff] }
 0x130   :  { %2009 = vmatprep.subr.bf16.mxu1 %v2321_v0  ;;  %v2052_v33 = vpack.c.bf16 %v403_v32, %v402_v31  ;;  %v689_v31 = vld [vmem:[#allocation2 + $0x140] sm:$0xff]  ;;  %v690_v32 = vld [vmem:[#allocation2 + $0x148] sm:$0xff] }
 0x133   :  { %2011 = vmatpush3.bf16.msra.mxu1 %v2010_v34  ;;  %v405_v34 = vld [vmem:[#allocation6 + $0x80] sm:$0xff] }
 0x134   :  { %2012 = vmatprep.subr.bf16.mxu1 %v2321_v0 }
 0x137   :  { %2014 = vmatpush3.bf16.msra.mxu1 %v2013_v37  ;;  %v2055_v37 = vpack.c.bf16 %v406_v35, %v405_v34  ;;  %v691_v34 = vld [vmem:[#allocation2 + $0x150] sm:$0xff]  ;;  %v692_v35 = vld [vmem:[#allocation2 + $0x158] sm:$0xff] }
 0x138   :  { %2015 = vmatprep.subr.bf16.mxu1 %v2321_v0  ;;  %v2094_v36 = vpack.c.bf16 %v692_v35, %v691_v34  ;;  %v722_v34 = vld [vmem:[#allocation6 + $0x138] sm:$0xff] }
 0x13b   :  { %2017 = vmatpush3.bf16.msra.mxu1 %v2016_v40  ;;  %v410_v40 = vld [vmem:[#allocation6 + $0xa8] sm:$0xff] }
 0x13c   :  { %2018 = vmatprep.subr.bf16.mxu1 %v2321_v0 }
 0x13f   :  { %2020 = vmatpush3.bf16.msra.mxu1 %v2019_v48  ;;  %v2067_v48 = vpack.c.bf16 %v414_v46, %v413_v45  ;;  %v701_v46 = vld [vmem:[#allocation4 + $0x118] sm:$0xff] }
 0x140   :  { %2021 = vmatprep.subr.bf16.mxu1 %v2321_v0 }
 0x143   :  { %2023 = vmatpush3.bf16.msra.mxu1 %v2022_v51  ;;  %v2070_v51 = vpack.c.bf16 %v416_v50, %v415_v49  ;;  %v702_v49 = vld [vmem:[#allocation4 + $0x120] sm:$0xff]  ;;  %v703_v50 = vld [vmem:[#allocation4 + $0x128] sm:$0xff] }
 0x144   :  { %2024 = vmatprep.subr.bf16.mxu1 %v2321_v0 }
 0x147   :  { %2026 = vmatpush3.bf16.msra.mxu1 %v2025_v54  ;;  %v2073_v54 = vpack.c.bf16 %v418_v53, %v417_v52  ;;  %v704_v52 = vld [vmem:[#allocation4 + $0x130] sm:$0xff]  ;;  %v705_v53 = vld [vmem:[#allocation4 + $0x138] sm:$0xff] }
 0x148   :  { %2027 = vmatprep.subr.bf16.mxu1 %v2321_v0 }
 0x14b   :  { %2029 = vmatpush3.bf16.msra.mxu1 %v2028_v57 }
 0x14c   :  { %2054 = vmatprep.subr.bf16.mxu1 %v2321_v0 }
 0x201   :  { %v250_v16 = vpop.f32.mrb[0].mxu1 }
 0x202   :  { %v254_v17 = vmax.f32 %v250_v16, 0.0  ;;  %v1583_v18 = vpop.f32.mrb[1].mxu1  ;;  %v2049_v16 = vpack.c.bf16 %v401_v15, %v400_v14  ;;  %v684_v14 = vld [vmem:[#allocation2 + $0x118] sm:$0xff] }
 0x203   :  { %v2082_v15 = vpack.c.bf16 %v684_v14, %v683_v12 }
 0x204   :  { %1617 = vmatmul.mubr.f32.vlgmr.msra.gmra.mrb[2].mxu0 %v254_v17 }
 0x205   :  { %1686 = vmatprep.mubr.msk.f32.mxu0 %vm2322_vm0, %v2323_v1  ;;  %2032 = vmatpush3.bf16.msra.mxu0 %v2031_v61 }
 0x206   :  { %2033 = vmatprep.subr.bf16.mxu0 %v2321_v0 }
 0x209   :  { %2035 = vmatpush3.bf16.msra.mxu0 %v2034_v63 }
 0x20a   :  { %2036 = vmatprep.subr.bf16.mxu0 %v2321_v0 }
 0x20d   :  { %2038 = vmatpush3.bf16.msra.mxu0 %v2037_v4 }
 0x20e   :  { %2039 = vmatprep.subr.bf16.mxu0 %v2321_v0 }
 0x211   :  { %2041 = vmatpush3.bf16.msra.mxu0 %v2040_v7 }
 0x212   :  { %2042 = vmatprep.subr.bf16.mxu0 %v2321_v0 }
 0x215   :  { %2044 = vmatpush3.bf16.msra.mxu0 %v2043_v10  ;;  %v681_v10 = vld [vmem:[#allocation2 + $0x100] sm:$0xff] }
 0x216   :  { %2045 = vmatprep.subr.bf16.mxu0 %v2321_v0 }
 0x219   :  { %2047 = vmatpush3.bf16.msra.mxu0 %v2046_v13  ;;  %v2079_v13 = vpack.c.bf16 %v682_v11, %v681_v10 }
 0x21a   :  { %2048 = vmatprep.subr.bf16.mxu0 %v2321_v0 }
 0x21d   :  { %2050 = vmatpush3.bf16.msra.mxu0 %v2049_v16  ;;  %v685_v16 = vld [vmem:[#allocation2 + $0x120] sm:$0xff] }
 0x21e   :  { %2051 = vmatprep.subr.bf16.mxu0 %v2321_v0 }
 0x221   :  { %2053 = vmatpush3.bf16.msra.mxu0 %v2052_v33  ;;  %v2091_v33 = vpack.c.bf16 %v690_v32, %v689_v31  ;;  %v720_v31 = vld [vmem:[#allocation6 + $0x128] sm:$0xff] }
 0x222   :  { %2078 = vmatprep.subr.bf16.mxu0 %v2321_v0 }
 0x2d7   :  { %v2451_v20 = vpop.f32.mrb[2].mxu0 }
 0x2d8   :  { %v1618_v21 = vpop.f32.mrb[3].mxu0  ;;  %v325_v22 = vadd.f32 %v2451_v20, %v112_v19 }
 0x2da   :  { %326 = vmax.xlane.f32.xlu0 %v325_v22 }
 0x367   :  { %v327_v25 = vpop.xlane.xlu0 %326 }
 0x368   :  { %vm328_vm1 = vcmp.ge.f32.partialorder %v325_v22, %v327_v25 }
 0x369   :  { %v329_v26 = vsel %vm328_vm1, %v2454_v24, 128 }
 0x36a   :  { %v331_v27 = vshra.s32 %v329_v26, 16  ;;  %v330_v41 = vand.u32 65535, %v329_v26 }
 0x36c   :  { %v333_v28 = vcvt.s32.f32 %v331_v27  ;;  %v332_v43 = vcvt.s32.f32 %v330_v41 }
 0x36e   :  { %334 = vmin.xlane.f32.xlu0 %v333_v28 }
 0x3fb   :  { %v335_v42 = vpop.xlane.xlu0 %334 }
 0x3fc   :  { %vm336_vm2 = vcmp.eq.f32.partialorder %v333_v28, %v335_v42  ;;  %v341_v17 = vcvt.f32.s32 %v335_v42  ;;  %v411_v42 = vld [vmem:[#allocation6 + $0xb0] sm:$0xff] }
 0x3fd   :  { %v337_v44 = vsel %vm336_vm2, %v332_v43, inf  ;;  %v412_v43 = vld [vmem:[#allocation6 + $0xb8] sm:$0xff] }
 0x3fe   :  { %338 = vmin.xlane.f32.xlu1 %v337_v44  ;;  %v342_v19 = vshll.u32 %v341_v17, 16  ;;  %v2064_v44 = vpack.c.bf16 %v412_v43, %v411_v42  ;;  %v686_v17 = vld [vmem:[#allocation2 + $0x128] sm:$0xff]  ;;  %v698_v42 = vld [vmem:[#allocation4 + $0x100] sm:$0xff] }
 0x3ff   :  { %v699_v43 = vld [vmem:[#allocation4 + $0x108] sm:$0xff] }
 0x400   :  { %v2103_v45 = vpack.c.bf16 %v699_v43, %v698_v42  ;;  %v728_v42 = vld [vmem:[#allocation6 + $0x168] sm:$0xff] }
 0x48b   :  { %v339_v18 = vpop.xlane.xlu1 %338 }
 0x48c   :  { %v340_v21 = vcvt.f32.s32 %v339_v18  ;;  %v2085_v18 = vpack.c.bf16 %v686_v17, %v685_v16 }
 0x48e   :  { %v343_v22 = vadd.s32 %v342_v19, %v340_v21  ;;  %v687_v19 = vld [vmem:[#allocation2 + $0x130] sm:$0xff]  ;;  %v688_v21 = vld [vmem:[#allocation2 + $0x138] sm:$0xff] }
 0x490   :  { %v360_v23 = vcvt.s32.f32 %v343_v22  ;;  %vm354_vm3 = vcmp.eq.s32.totalorder %v2454_v24, %v343_v22  ;;  %v2088_v22 = vpack.c.bf16 %v688_v21, %v687_v19  ;;  %v713_v19 = vld [vmem:[#allocation4 + $0x178] sm:$0xff] }
 0x491   :  { %v2474_v25 = vsel %vm354_vm3, %v2451_v20, 0.0  ;;  %vm1294_vm3 = vcmp.eq.s32.totalorder %v2454_v24, 3 }
 0x492   :  { %v361_v26 = vmul.f32 0.2, %v360_v23 }
 0x494   :  { %v362_v27 = vadd.f32 -1.0, %v361_v26 }
 0x496   :  { %v2477_v28 = vadd.f32 0.1, %v362_v27 }
 0x498   :  { %v368_v29 = vsel %vm367_vm4, %v2477_v28, 0.0  ;;  %vm1297_vm4 = vcmp.eq.s32.totalorder %v2454_v24, 4 }
 0x499   :  { %v2481_v30 = vadd.f32 %v368_v29, %v2428_v47  ;;  %v409_v47 = vld [vmem:[#allocation6 + $0xa0] sm:$0xff] }
 0x49a   :  { %v2061_v41 = vpack.c.bf16 %v410_v40, %v409_v47  ;;  %v695_v47 = vld [vmem:[#allocation2 + $0x170] sm:$0xff]  ;;  %v696_v40 = vld [vmem:[#allocation2 + $0x178] sm:$0xff] }
 0x49b   :  { %1652 = vmatmul.mubr.f32.vlgmr.msra.gmra.mrb[2].mxu1 %v2481_v30 }
 0x49c   :  { %1721 = vmatprep.mubr.msk.f32.mxu1 %vm2322_vm0, %v2323_v1  ;;  %2056 = vmatpush3.bf16.msra.mxu1 %v2055_v37  ;;  %v693_v37 = vld [vmem:[#allocation2 + $0x160] sm:$0xff] }
 0x49d   :  { %2057 = vmatprep.subr.bf16.mxu1 %v2321_v0 }
 0x4a0   :  { %2059 = vmatpush3.bf16.msra.mxu1 %v2058_v39  ;;  %v2097_v39 = vpack.c.bf16 %v694_v38, %v693_v37  ;;  %v724_v37 = vld [vmem:[#allocation6 + $0x148] sm:$0xff] }
 0x4a1   :  { %2060 = vmatprep.subr.bf16.mxu1 %v2321_v0 }
 0x4a4   :  { %2062 = vmatpush3.bf16.msra.mxu1 %v2061_v41  ;;  %v2100_v41 = vpack.c.bf16 %v696_v40, %v695_v47  ;;  %v726_v47 = vld [vmem:[#allocation6 + $0x158] sm:$0xff] }
 0x4a5   :  { %2063 = vmatprep.subr.bf16.mxu1 %v2321_v0 }
 0x4a8   :  { %2065 = vmatpush3.bf16.msra.mxu1 %v2064_v44  ;;  %v700_v44 = vld [vmem:[#allocation4 + $0x110] sm:$0xff] }
 0x4a9   :  { %2066 = vmatprep.subr.bf16.mxu1 %v2321_v0 }
 0x4ac   :  { %2068 = vmatpush3.bf16.msra.mxu1 %v2067_v48  ;;  %v2106_v48 = vpack.c.bf16 %v701_v46, %v700_v44 }
 0x4ad   :  { %2069 = vmatprep.subr.bf16.mxu1 %v2321_v0 }
 0x4b0   :  { %2071 = vmatpush3.bf16.msra.mxu1 %v2070_v51  ;;  %v2109_v51 = vpack.c.bf16 %v703_v50, %v702_v49  ;;  %v730_v49 = vld [vmem:[#allocation6 + $0x178] sm:$0xff] }
 0x4b1   :  { %2072 = vmatprep.subr.bf16.mxu1 %v2321_v0 }
 0x4b4   :  { %2074 = vmatpush3.bf16.msra.mxu1 %v2073_v54  ;;  %v2112_v54 = vpack.c.bf16 %v705_v53, %v704_v52 }
 0x4b5   :  { %2075 = vmatprep.subr.bf16.mxu1 %v2321_v0 }
 0x4b8   :  { %2077 = vmatpush3.bf16.msra.mxu1 %v2076_v60  ;;  %v2118_v60 = vpack.c.bf16 %v709_v59, %v708_v58 }
 0x4b9   :  { %2102 = vmatprep.subr.bf16.mxu1 %v2321_v0 }
 0x56e   :  { %v489_v55 = vpop.f32.mrb[2].mxu1 }
 0x56f   :  { %v493_v56 = vmax.f32 %v489_v55, 0.0  ;;  %v1653_v57 = vpop.f32.mrb[3].mxu1  ;;  %v706_v55 = vld [vmem:[#allocation4 + $0x140] sm:$0xff] }
 0x571   :  { %1687 = vmatmul.mubr.f32.vlgmr.msra.gmra.mrb[4].mxu0 %v493_v56  ;;  %v707_v56 = vld [vmem:[#allocation4 + $0x148] sm:$0xff] }
 0x572   :  { %1756 = vmatprep.mubr.msk.f32.mxu0 %vm2322_vm0, %v2323_v1  ;;  %2080 = vmatpush3.bf16.msra.mxu0 %v2079_v13  ;;  %v2115_v57 = vpack.c.bf16 %v707_v56, %v706_v55  ;;  %v365_v13 = vsel %vm364_vm8, %v2477_v28, 0.0  ;;  %v716_v28 = vld [vmem:[#allocation6 + $0x108] sm:$0xff] }
 0x573   :  { %2081 = vmatprep.subr.bf16.mxu0 %v2321_v0 }
 0x576   :  { %2083 = vmatpush3.bf16.msra.mxu0 %v2082_v15 }
 0x577   :  { %2084 = vmatprep.subr.bf16.mxu0 %v2321_v0 }
 0x57a   :  { %2086 = vmatpush3.bf16.msra.mxu0 %v2085_v18  ;;  %v712_v18 = vld [vmem:[#allocation4 + $0x170] sm:$0xff] }
 0x57b   :  { %2087 = vmatprep.subr.bf16.mxu0 %v2321_v0  ;;  %v2124_v21 = vpack.c.bf16 %v713_v19, %v712_v18 }
 0x57e   :  { %2089 = vmatpush3.bf16.msra.mxu0 %v2088_v22  ;;  %v715_v22 = vld [vmem:[#allocation6 + $0x100] sm:$0xff] }
 0x57f   :  { %2090 = vmatprep.subr.bf16.mxu0 %v2321_v0 }
 0x582   :  { %2092 = vmatpush3.bf16.msra.mxu0 %v2091_v33  ;;  %v721_v33 = vld [vmem:[#allocation6 + $0x130] sm:$0xff] }
 0x583   :  { %2093 = vmatprep.subr.bf16.mxu0 %v2321_v0  ;;  %v2136_v35 = vpack.c.bf16 %v722_v34, %v721_v33  ;;  %v1006_v33 = vld [vmem:[#allocation2 + $0x1f8] sm:$0xff] }
 0x586   :  { %2095 = vmatpush3.bf16.msra.mxu0 %v2094_v36  ;;  %v723_v36 = vld [vmem:[#allocation6 + $0x140] sm:$0xff] }
 0x587   :  { %2096 = vmatprep.subr.bf16.mxu0 %v2321_v0  ;;  %v2139_v38 = vpack.c.bf16 %v724_v37, %v723_v36  ;;  %v1009_v36 = vld [vmem:[#allocation4 + $0x188] sm:$0xff]  ;;  %v1010_v37 = vld [vmem:[#allocation4 + $0x190] sm:$0xff] }
 0x58a   :  { %2098 = vmatpush3.bf16.msra.mxu0 %v2097_v39  ;;  %v725_v39 = vld [vmem:[#allocation6 + $0x150] sm:$0xff] }
 0x58b   :  { %2099 = vmatprep.subr.bf16.mxu0 %v2321_v0  ;;  %v2142_v40 = vpack.c.bf16 %v726_v47, %v725_v39  ;;  %v1011_v39 = vld [vmem:[#allocation4 + $0x198] sm:$0xff] }
 0x58c   :  { %v2178_v47 = vpack.c.bf16 %v1011_v39, %v1010_v37 }
 0x58e   :  { %2101 = vmatpush3.bf16.msra.mxu0 %v2100_v41  ;;  %v727_v41 = vld [vmem:[#allocation6 + $0x160] sm:$0xff] }
 0x58f   :  { %2126 = vmatprep.subr.bf16.mxu0 %v2321_v0  ;;  %v2145_v43 = vpack.c.bf16 %v728_v42, %v727_v41  ;;  %v1013_v41 = vld [vmem:[#allocation4 + $0x1a8] sm:$0xff] }
 0x644   :  { %v560_v61 = vpop.f32.mrb[4].mxu0 }
 0x645   :  { %v564_v62 = vmax.f32 %v560_v61, 0.0  ;;  %v1688_v63 = vpop.f32.mrb[5].mxu0  ;;  %v710_v61 = vld [vmem:[#allocation4 + $0x160] sm:$0xff] }
 0x647   :  { %1722 = vmatmul.mubr.f32.vlgmr.msra.gmra.mrb[4].mxu1 %v564_v62  ;;  %v711_v62 = vld [vmem:[#allocation4 + $0x168] sm:$0xff] }
 0x648   :  { %1791 = vmatprep.mubr.msk.f32.mxu1 %vm2322_vm0, %v2323_v1  ;;  %2104 = vmatpush3.bf16.msra.mxu1 %v2103_v45  ;;  %v2121_v63 = vpack.c.bf16 %v711_v62, %v710_v61  ;;  %v991_v62 = vld [vmem:[#allocation2 + $0x180] sm:$0xff] }
 0x649   :  { %2105 = vmatprep.subr.bf16.mxu1 %v2321_v0 }
 0x64c   :  { %2107 = vmatpush3.bf16.msra.mxu1 %v2106_v48  ;;  %v729_v48 = vld [vmem:[#allocation6 + $0x170] sm:$0xff] }
 0x64d   :  { %2108 = vmatprep.subr.bf16.mxu1 %v2321_v0  ;;  %v2148_v50 = vpack.c.bf16 %v730_v49, %v729_v48  ;;  %v1017_v48 = vld [vmem:[#allocation4 + $0x1c8] sm:$0xff] }
 0x650   :  { %2110 = vmatpush3.bf16.msra.mxu1 %v2109_v51 }
 0x651   :  { %2111 = vmatprep.subr.bf16.mxu1 %v2321_v0 }
 0x654   :  { %2113 = vmatpush3.bf16.msra.mxu1 %v2112_v54  ;;  %v1308_v54 = vld [vmem:[%s2623_s4 + $0x10] sm:$0xff] }
 0x655   :  { %2114 = vmatprep.subr.bf16.mxu1 %v2321_v0 }
 0x658   :  { %2116 = vmatpush3.bf16.msra.mxu1 %v2115_v57 }
 0x659   :  { %2117 = vmatprep.subr.bf16.mxu1 %v2321_v0 }
 0x65c   :  { %2119 = vmatpush3.bf16.msra.mxu1 %v2118_v60 }
 0x65d   :  { %2120 = vmatprep.subr.bf16.mxu1 %v2321_v0 }
 0x660   :  { %2122 = vmatpush3.bf16.msra.mxu1 %v2121_v63  ;;  %v992_v63 = vld [vmem:[#allocation2 + $0x188] sm:$0xff] }
 0x661   :  { %2123 = vmatprep.subr.bf16.mxu1 %v2321_v0 }
 0x664   :  { %2125 = vmatpush3.bf16.msra.mxu1 %v2124_v21  ;;  %v999_v21 = vld [vmem:[#allocation2 + $0x1c0] sm:$0xff] }
 0x665   :  { %2150 = vmatprep.subr.bf16.mxu1 %v2321_v0 }
 0x71a   :  { %v2502_v3 = vpop.f32.mrb[4].mxu1 }
 0x71b   :  { %v1723_v4 = vpop.f32.mrb[5].mxu1  ;;  %v635_v5 = vadd.f32 %v1307_v2, %v2502_v3 }
 0x71d   :  { %636 = vmax.xlane.f32.xlu1 %v635_v5 }
 0x7aa   :  { %v637_v6 = vpop.xlane.xlu1 %636 }
 0x7ab   :  { %vm638_vm5 = vcmp.ge.f32.partialorder %v635_v5, %v637_v6 }
 0x7ac   :  { %v639_v7 = vsel %vm638_vm5, %v2454_v24, 128 }
 0x7ad   :  { %v641_v8 = vshra.s32 %v639_v7, 16  ;;  %v640_v23 = vand.u32 65535, %v639_v7 }
 0x7af   :  { %v643_v9 = vcvt.s32.f32 %v641_v8  ;;  %v642_v27 = vcvt.s32.f32 %v640_v23  ;;  %v717_v23 = vld [vmem:[#allocation6 + $0x110] sm:$0xff] }
 0x7b1   :  { %644 = vmin.xlane.f32.xlu0 %v643_v9 }
 0x83e   :  { %v645_v26 = vpop.xlane.xlu0 %644 }
 0x83f   :  { %vm646_vm6 = vcmp.eq.f32.partialorder %v643_v9, %v645_v26  ;;  %v651_v2 = vcvt.f32.s32 %v645_v26  ;;  %v2127_v26 = vpack.c.bf16 %v716_v28, %v715_v22  ;;  %v1000_v22 = vld [vmem:[#allocation2 + $0x1c8] sm:$0xff] }
 0x840   :  { %v647_v29 = vsel %vm646_vm6, %v642_v27, inf  ;;  %v718_v27 = vld [vmem:[#allocation6 + $0x118] sm:$0xff]  ;;  %v2163_v28 = vpack.c.bf16 %v1000_v22, %v999_v21 }
 0x841   :  { %648 = vmin.xlane.f32.xlu1 %v647_v29  ;;  %v652_v5 = vshll.u32 %v651_v2, 16  ;;  %v2130_v29 = vpack.c.bf16 %v718_v27, %v717_v23  ;;  %v993_v2 = vld [vmem:[#allocation2 + $0x190] sm:$0xff]  ;;  %v1028_v21 = vld [vmem:[#allocation6 + $0x198] sm:$0xff] }
 0x842   :  { %v1001_v23 = vld [vmem:[#allocation2 + $0x1d0] sm:$0xff] }
 0x8ce   :  { %v649_v4 = vpop.xlane.xlu1 %648 }
 0x8cf   :  { %v650_v6 = vcvt.f32.s32 %v649_v4  ;;  %v2151_v4 = vpack.c.bf16 %v992_v63, %v991_v62 }
 0x8d1   :  { %v653_v7 = vadd.s32 %v652_v5, %v650_v6  ;;  %v994_v5 = vld [vmem:[#allocation2 + $0x198] sm:$0xff] }
 0x8d2   :  { %v2154_v6 = vpack.c.bf16 %v994_v5, %v993_v2 }
 0x8d3   :  { %v670_v8 = vcvt.s32.f32 %v653_v7  ;;  %vm664_vm7 = vcmp.eq.s32.totalorder %v2454_v24, %v653_v7  ;;  %v995_v7 = vld [vmem:[#allocation2 + $0x1a0] sm:$0xff] }
 0x8d4   :  { %v2523_v9 = vsel %vm664_vm7, %v2502_v3, 0.0 }
 0x8d5   :  { %v671_v10 = vmul.f32 0.2, %v670_v8  ;;  %v996_v8 = vld [vmem:[#allocation2 + $0x1a8] sm:$0xff] }
 0x8d7   :  { %v672_v11 = vadd.f32 -1.0, %v671_v10  ;;  %v2157_v10 = vpack.c.bf16 %v996_v8, %v995_v7 }
 0x8d9   :  { %v673_v12 = vadd.f32 0.1, %v672_v11  ;;  %v997_v11 = vld [vmem:[#allocation2 + $0x1b0] sm:$0xff] }
 0x8db   :  { %v675_v14 = vsel %vm674_vm9, %v673_v12, 0.0  ;;  %v678_v15 = vsel %vm677_vm10, %v673_v12, 0.0  ;;  %v998_v12 = vld [vmem:[#allocation2 + $0x1b8] sm:$0xff] }
 0x8dc   :  { %v2529_v16 = vadd.f32 %v675_v14, %v365_v13  ;;  %v2532_v17 = vadd.f32 %v678_v15, %v2481_v30  ;;  %v719_v30 = vld [vmem:[#allocation6 + $0x120] sm:$0xff]  ;;  %v2160_v13 = vpack.c.bf16 %v998_v12, %v997_v11  ;;  %v1022_v11 = vld [vmem:[#allocation4 + $0x1f0] sm:$0xff]  ;;  %v1023_v12 = vld [vmem:[#allocation4 + $0x1f8] sm:$0xff] }
 0x8dd   :  { %v2133_v32 = vpack.c.bf16 %v720_v31, %v719_v30  ;;  %v1004_v30 = vld [vmem:[#allocation2 + $0x1e8] sm:$0xff] }
 0x8de   :  { %1757 = vmatmul.mubr.f32.vlgmr.msra.gmra.mrb[6].mxu0 %v2532_v17 }
 0x8df   :  { %1826 = vmatprep.mubr.msk.f32.mxu0 %vm2322_vm0, %v2323_v1  ;;  %2128 = vmatpush3.bf16.msra.mxu0 %v2127_v26  ;;  %v1002_v26 = vld [vmem:[#allocation2 + $0x1d8] sm:$0xff] }
 0x8e0   :  { %2129 = vmatprep.subr.bf16.mxu0 %v2321_v0  ;;  %v2166_v27 = vpack.c.bf16 %v1002_v26, %v1001_v23  ;;  %v1032_v23 = vld [vmem:[#allocation6 + $0x1b8] sm:$0xff] }
 0x8e3   :  { %2131 = vmatpush3.bf16.msra.mxu0 %v2130_v29  ;;  %v1003_v29 = vld [vmem:[#allocation2 + $0x1e0] sm:$0xff] }
 0x8e4   :  { %2132 = vmatprep.subr.bf16.mxu0 %v2321_v0  ;;  %v2169_v31 = vpack.c.bf16 %v1004_v30, %v1003_v29  ;;  %v1034_v29 = vld [vmem:[#allocation6 + $0x1c8] sm:$0xff] }
 0x8e7   :  { %2134 = vmatpush3.bf16.msra.mxu0 %v2133_v32  ;;  %v1005_v32 = vld [vmem:[#allocation2 + $0x1f0] sm:$0xff] }
 0x8e8   :  { %2135 = vmatprep.subr.bf16.mxu0 %v2321_v0  ;;  %v2172_v34 = vpack.c.bf16 %v1006_v33, %v1005_v32  ;;  %v1036_v32 = vld [vmem:[#allocation6 + $0x1d8] sm:$0xff] }
 0x8eb   :  { %2137 = vmatpush3.bf16.msra.mxu0 %v2136_v35  ;;  %v1008_v35 = vld [vmem:[#allocation4 + $0x180] sm:$0xff] }
 0x8ec   :  { %2138 = vmatprep.subr.bf16.mxu0 %v2321_v0 }
 0x8ef   :  { %2140 = vmatpush3.bf16.msra.mxu0 %v2139_v38  ;;  %v2175_v38 = vpack.c.bf16 %v1009_v36, %v1008_v35  ;;  %v1038_v35 = vld [vmem:[#allocation6 + $0x1e8] sm:$0xff] }
 0x8f0   :  { %2141 = vmatprep.subr.bf16.mxu0 %v2321_v0 }
 0x8f3   :  { %2143 = vmatpush3.bf16.msra.mxu0 %v2142_v40  ;;  %v1012_v40 = vld [vmem:[#allocation4 + $0x1a0] sm:$0xff] }
 0x8f4   :  { %2144 = vmatprep.subr.bf16.mxu0 %v2321_v0  ;;  %v2181_v42 = vpack.c.bf16 %v1013_v41, %v1012_v40  ;;  %v1040_v40 = vld [vmem:[#allocation6 + $0x1f8] sm:$0xff] }
 0x8f7   :  { %2146 = vmatpush3.bf16.msra.mxu0 %v2145_v43  ;;  %v1014_v43 = vld [vmem:[#allocation4 + $0x1b0] sm:$0xff] }
 0x8f8   :  { %2147 = vmatprep.subr.bf16.mxu0 %v2321_v0 }
 0x8fb   :  { %2149 = vmatpush3.bf16.msra.mxu0 %v2148_v50  ;;  %v1018_v50 = vld [vmem:[#allocation4 + $0x1d0] sm:$0xff] }
 0x8fc   :  { %2174 = vmatprep.subr.bf16.mxu0 %v2321_v0 }
 0x9b1   :  { %v799_v44 = vpop.f32.mrb[6].mxu0 }
 0x9b2   :  { %v803_v45 = vmax.f32 %v799_v44, 0.0  ;;  %v1758_v46 = vpop.f32.mrb[7].mxu0  ;;  %v1015_v44 = vld [vmem:[#allocation4 + $0x1b8] sm:$0xff] }
 0x9b3   :  { %v1016_v46 = vld [vmem:[#allocation4 + $0x1c0] sm:$0xff] }
 0x9b4   :  { %1792 = vmatmul.mubr.f32.vlgmr.msra.gmra.mrb[6].mxu1 %v803_v45  ;;  %v2184_v45 = vpack.c.bf16 %v1015_v44, %v1014_v43  ;;  %v2187_v49 = vpack.c.bf16 %v1017_v48, %v1016_v46 }
 0x9b5   :  { %1861 = vmatprep.mubr.msk.f32.mxu1 %vm2322_vm0, %v2323_v1  ;;  %2152 = vmatpush3.bf16.msra.mxu1 %v2151_v4 }
 0x9b6   :  { %2153 = vmatprep.subr.bf16.mxu1 %v2321_v0 }
 0x9b9   :  { %2155 = vmatpush3.bf16.msra.mxu1 %v2154_v6 }
 0x9ba   :  { %2156 = vmatprep.subr.bf16.mxu1 %v2321_v0 }
 0x9bd   :  { %2158 = vmatpush3.bf16.msra.mxu1 %v2157_v10 }
 0x9be   :  { %2159 = vmatprep.subr.bf16.mxu1 %v2321_v0 }
 0x9c1   :  { %2161 = vmatpush3.bf16.msra.mxu1 %v2160_v13  ;;  %v2196_v13 = vpack.c.bf16 %v1023_v12, %v1022_v11 }
 0x9c2   :  { %2162 = vmatprep.subr.bf16.mxu1 %v2321_v0 }
 0x9c5   :  { %2164 = vmatpush3.bf16.msra.mxu1 %v2163_v28  ;;  %v1030_v28 = vld [vmem:[#allocation6 + $0x1a8] sm:$0xff] }
 0x9c6   :  { %2165 = vmatprep.subr.bf16.mxu1 %v2321_v0 }
 0x9c9   :  { %2167 = vmatpush3.bf16.msra.mxu1 %v2166_v27  ;;  %v1033_v27 = vld [vmem:[#allocation6 + $0x1c0] sm:$0xff] }
 0x9ca   :  { %2168 = vmatprep.subr.bf16.mxu1 %v2321_v0  ;;  %v2211_v30 = vpack.c.bf16 %v1034_v29, %v1033_v27 }
 0x9cd   :  { %2170 = vmatpush3.bf16.msra.mxu1 %v2169_v31  ;;  %v1035_v31 = vld [vmem:[#allocation6 + $0x1d0] sm:$0xff] }
 0x9ce   :  { %2171 = vmatprep.subr.bf16.mxu1 %v2321_v0  ;;  %v2214_v33 = vpack.c.bf16 %v1036_v32, %v1035_v31 }
 0x9d1   :  { %2173 = vmatpush3.bf16.msra.mxu1 %v2172_v34  ;;  %v1037_v34 = vld [vmem:[#allocation6 + $0x1e0] sm:$0xff] }
 0x9d2   :  { %2198 = vmatprep.subr.bf16.mxu1 %v2321_v0  ;;  %v2217_v36 = vpack.c.bf16 %v1038_v35, %v1037_v34 }
 0xa87   :  { %v870_v51 = vpop.f32.mrb[6].mxu1 }
 0xa88   :  { %v874_v52 = vmax.f32 %v870_v51, 0.0  ;;  %v1793_v53 = vpop.f32.mrb[7].mxu1  ;;  %v1019_v51 = vld [vmem:[#allocation4 + $0x1d8] sm:$0xff] }
 0xa89   :  { %v1020_v53 = vld [vmem:[#allocation4 + $0x1e0] sm:$0xff] }
 0xa8a   :  { %1827 = vmatmul.mubr.f32.vlgmr.msra.gmra.mrb[8].mxu0 %v874_v52  ;;  %v2190_v52 = vpack.c.bf16 %v1019_v51, %v1018_v50 }
 0xa8b   :  { %1896 = vmatprep.mubr.msk.f32.mxu0 %vm2322_vm0, %v2323_v1  ;;  %2176 = vmatpush3.bf16.msra.mxu0 %v2175_v38 }
 0xa8c   :  { %2177 = vmatprep.subr.bf16.mxu0 %v2321_v0 }
 0xa8f   :  { %2179 = vmatpush3.bf16.msra.mxu0 %v2178_v47  ;;  %v1039_v47 = vld [vmem:[#allocation6 + $0x1f0] sm:$0xff] }
 0xa90   :  { %2180 = vmatprep.subr.bf16.mxu0 %v2321_v0  ;;  %v2220_v41 = vpack.c.bf16 %v1040_v40, %v1039_v47 }
 0xa93   :  { %2182 = vmatpush3.bf16.msra.mxu0 %v2181_v42 }
 0xa94   :  { %2183 = vmatprep.subr.bf16.mxu0 %v2321_v0 }
 0xa97   :  { %2185 = vmatpush3.bf16.msra.mxu0 %v2184_v45  ;;  %v1309_v45 = vld [vmem:[%s2623_s4 + $0x18] sm:$0xff] }
 0xa98   :  { %2186 = vmatprep.subr.bf16.mxu0 %v2321_v0 }
 0xa9b   :  { %2188 = vmatpush3.bf16.msra.mxu0 %v2187_v49 }
 0xa9c   :  { %2189 = vmatprep.subr.bf16.mxu0 %v2321_v0 }
 0xa9f   :  { %2191 = vmatpush3.bf16.msra.mxu0 %v2190_v52 }
 0xaa0   :  { %2192 = vmatprep.subr.bf16.mxu0 %v2321_v0 }
 0xb5d   :  { %v2553_v55 = vpop.f32.mrb[8].mxu0 }
 0xb5e   :  { %v1828_v56 = vpop.f32.mrb[9].mxu0  ;;  %v945_v57 = vadd.f32 %v1308_v54, %v2553_v55  ;;  %v1021_v54 = vld [vmem:[#allocation4 + $0x1e8] sm:$0xff] }
 0xb5f   :  { %v2193_v56 = vpack.c.bf16 %v1021_v54, %v1020_v53 }
 0xb60   :  { %946 = vmax.xlane.f32.xlu0 %v945_v57 }
 0xb61   :  { %2194 = vmatpush3.bf16.msra.mxu0 %v2193_v56 }
 0xb62   :  { %2195 = vmatprep.subr.bf16.mxu0 %v2321_v0 }
 0xb65   :  { %2197 = vmatpush3.bf16.msra.mxu0 %v2196_v13 }
 0xbed   :  { %v947_v58 = vpop.xlane.xlu0 %946 }
 0xbee   :  { %vm948_vm11 = vcmp.ge.f32.partialorder %v945_v57, %v947_v58 }
 0xbef   :  { %v949_v59 = vsel %vm948_vm11, %v2454_v24, 128 }
 0xbf0   :  { %v951_v60 = vshra.s32 %v949_v59, 16  ;;  %v950_v14 = vand.u32 65535, %v949_v59 }
 0xbf2   :  { %v953_v61 = vcvt.s32.f32 %v951_v60  ;;  %v952_v18 = vcvt.s32.f32 %v950_v14  ;;  %v1025_v14 = vld [vmem:[#allocation6 + $0x180] sm:$0xff] }
 0xbf4   :  { %954 = vmin.xlane.f32.xlu1 %v953_v61 }
 0xc81   :  { %v955_v15 = vpop.xlane.xlu1 %954 }
 0xc82   :  { %vm956_vm12 = vcmp.eq.f32.partialorder %v953_v61, %v955_v15  ;;  %v961_v57 = vcvt.f32.s32 %v955_v15  ;;  %v1026_v15 = vld [vmem:[#allocation6 + $0x188] sm:$0xff] }
 0xc83   :  { %v957_v19 = vsel %vm956_vm12, %v952_v18, inf  ;;  %v1027_v18 = vld [vmem:[#allocation6 + $0x190] sm:$0xff] }
 0xc84   :  { %958 = vmin.xlane.f32.xlu0 %v957_v19  ;;  %v962_v59 = vshll.u32 %v961_v57, 16  ;;  %v2199_v19 = vpack.c.bf16 %v1026_v15, %v1025_v14  ;;  %v2202_v22 = vpack.c.bf16 %v1028_v21, %v1027_v18 }
 0xd11   :  { %v959_v58 = vpop.xlane.xlu0 %958 }
 0xd12   :  { %v960_v60 = vcvt.f32.s32 %v959_v58 }
 0xd14   :  { %v963_v61 = vadd.s32 %v962_v59, %v960_v60 }
 0xd16   :  { %v980_v62 = vcvt.s32.f32 %v963_v61  ;;  %vm974_vm13 = vcmp.eq.s32.totalorder %v2454_v24, %v963_v61 }
 0xd17   :  { %v2574_v63 = vsel %vm974_vm13, %v2553_v55, 0.0 }
 0xd18   :  { %v981_v2 = vmul.f32 0.2, %v980_v62 }
 0xd1a   :  { %v982_v4 = vadd.f32 -1.0, %v981_v2 }
 0xd1c   :  { %v983_v5 = vadd.f32 0.1, %v982_v4 }
 0xd1e   :  { %v985_v6 = vsel %vm984_vm14, %v983_v5, 0.0  ;;  %v988_v7 = vsel %vm987_vm15, %v983_v5, 0.0 }
 0xd1f   :  { %v2579_v8 = vadd.f32 %v985_v6, %v2529_v16  ;;  %v989_v10 = vadd.f32 %v988_v7, %v2532_v17  ;;  %v1029_v16 = vld [vmem:[#allocation6 + $0x1a0] sm:$0xff] }
 0xd20   :  { %v2205_v17 = vpack.c.bf16 %v1030_v28, %v1029_v16 }
 0xd21   :  { %1862 = vmatmul.mubr.f32.vlgmr.msra.gmra.mrb[8].mxu1 %v989_v10 }
 0xd22   :  { %1931 = vmatprep.mubr.msk.f32.mxu1 %vm2322_vm0, %v2323_v1  ;;  %2200 = vmatpush3.bf16.msra.mxu1 %v2199_v19  ;;  %v1031_v1 = vld [vmem:[#allocation6 + $0x1b0] sm:$0xff] }
 0xd23   :  { %2201 = vmatprep.subr.bf16.mxu1 %v2321_v0  ;;  %v2208_v26 = vpack.c.bf16 %v1032_v23, %v1031_v1 }
 0xd26   :  { %2203 = vmatpush3.bf16.msra.mxu1 %v2202_v22 }
 0xd27   :  { %2204 = vmatprep.subr.bf16.mxu1 %v2321_v0 }
 0xd2a   :  { %2206 = vmatpush3.bf16.msra.mxu1 %v2205_v17 }
 0xd2b   :  { %2207 = vmatprep.subr.bf16.mxu1 %v2321_v0 }
 0xd2e   :  { %2209 = vmatpush3.bf16.msra.mxu1 %v2208_v26 }
 0xd2f   :  { %2210 = vmatprep.subr.bf16.mxu1 %v2321_v0 }
 0xd32   :  { %2212 = vmatpush3.bf16.msra.mxu1 %v2211_v30 }
 0xd33   :  { %2213 = vmatprep.subr.bf16.mxu1 %v2321_v0 }
 0xd36   :  { %2215 = vmatpush3.bf16.msra.mxu1 %v2214_v33 }
 0xd37   :  { %2216 = vmatprep.subr.bf16.mxu1 %v2321_v0 }
 0xd3a   :  { %2218 = vmatpush3.bf16.msra.mxu1 %v2217_v36 }
 0xd3b   :  { %2219 = vmatprep.subr.bf16.mxu1 %v2321_v0 }
 0xd3e   :  { %2221 = vmatpush3.bf16.msra.mxu1 %v2220_v41 }
 0xdf4   :  { %v1109_v37 = vpop.f32.mrb[8].mxu1 }
 0xdf5   :  { %v1113_v38 = vmax.f32 %v1109_v37, 0.0  ;;  %v1863_v39 = vpop.f32.mrb[9].mxu1 }
 0xdf7   :  { %1897 = vmatmul.mubr.f32.vlgmr.msra.gmra.mrb[10].mxu0 %v1113_v38 }
 0xeca   :  { %v1180_v42 = vpop.f32.mrb[10].mxu0 }
 0xecb   :  { %v1184_v43 = vmax.f32 %v1180_v42, 0.0  ;;  %v1898_v44 = vpop.f32.mrb[11].mxu0 }
 0xecd   :  { %1932 = vmatmul.mubr.f32.vlgmr.msra.gmra.mrb[10].mxu1 %v1184_v43 }
 0xfa0   :  { %v1251_v46 = vpop.f32.mrb[10].mxu1 }
 0xfa1   :  { %v1933_v48 = vpop.f32.mrb[11].mxu1  ;;  %v1255_v49 = vadd.f32 %v1309_v45, %v1251_v46 }
 0xfa3   :  { %1256 = vmax.xlane.f32.xlu1 %v1255_v49 }
 0xfa7   :  { %344 = vmax.xlane.f32.xlu1 %v2451_v20 }
 0xfab   :  { %964 = vmax.xlane.f32.xlu1 %v2553_v55 }
0x1030   :  { %v1257_v0 = vpop.xlane.xlu1 %1256 }
0x1031   :  { %vm1258_vm0 = vcmp.ge.f32.partialorder %v1255_v49, %v1257_v0 }
0x1032   :  { %v1259_v50 = vsel %vm1258_vm0, %v2454_v24, 128 }
0x1033   :  { %v1261_v51 = vshra.s32 %v1259_v50, 16 }
0x1034   :  { %v2597_v52 = vpop.xlane.xlu1 %344 }
0x1035   :  { %v346_v53 = vsub.f32 %v2451_v20, %v2597_v52  ;;  %v1263_v54 = vcvt.s32.f32 %v1261_v51  ;;  %v1260_v20 = vand.u32 65535, %v1259_v50 }
0x1037   :  { %v347_v56 = vmul.f32 1.442695, %v346_v53  ;;  %1264 = vmin.xlane.f32.xlu0 %v1263_v54  ;;  %v1262_v2 = vcvt.s32.f32 %v1260_v20 }
0x1038   :  { %v2601_v57 = vpop.xlane.xlu1 %964 }
0x1039   :  { %2230 = vpow2.f32 %v347_v56  ;;  %v966_v58 = vsub.f32 %v2553_v55, %v2601_v57 }
0x103b   :  { %v967_v59 = vmul.f32 1.442695, %v966_v58  ;;  %654 = vmax.xlane.f32.xlu0 %v2502_v3 }
0x103d   :  { %2232 = vpow2.f32 %v967_v59 }
0x103f   :  { %1274 = vmax.xlane.f32.xlu0 %v1251_v46 }
0x1043   :  { %v2231_v60 = vpop.eup %2230 }
0x1044   :  { %349 = vadd.xlane.f32.xlu0 %v2231_v60 }
0x1047   :  { %v2233_v61 = vpop.eup %2232 }
0x1048   :  { %969 = vadd.xlane.f32.xlu0 %v2233_v61 }
0x104c   :  { %356 = vadd.xlane.f32.xlu0 %v2474_v25 }
0x1050   :  { %976 = vadd.xlane.f32.xlu0 %v2574_v63 }
0x10c4   :  { %v1265_v62 = vpop.xlane.xlu0 %1264 }
0x10c5   :  { %vm1266_vm1 = vcmp.eq.f32.partialorder %v1263_v54, %v1265_v62  ;;  %v1271_v63 = vcvt.f32.s32 %v1265_v62 }
0x10c6   :  { %v1267_v4 = vsel %vm1266_vm1, %v1262_v2, inf }
0x10c7   :  { %1268 = vmin.xlane.f32.xlu1 %v1267_v4  ;;  %v1272_v14 = vshll.u32 %v1271_v63, 16 }
0x10c8   :  { %v655_v55 = vpop.xlane.xlu0 %654 }
0x10c9   :  { %v656_v5 = vsub.f32 %v2502_v3, %v655_v55 }
0x10cb   :  { %v657_v6 = vmul.f32 1.442695, %v656_v5 }
0x10cc   :  { %v1275_v7 = vpop.xlane.xlu0 %1274 }
0x10cd   :  { %2234 = vpow2.f32 %v657_v6  ;;  %v1276_v10 = vsub.f32 %v1251_v46, %v1275_v7 }
0x10cf   :  { %v1277_v11 = vmul.f32 1.442695, %v1276_v10 }
0x10d1   :  { %2236 = vpow2.f32 %v1277_v11  ;;  %v350_v1 = vpop.xlane.xlu0 %349 }
0x10d5   :  { %v970_v23 = vpop.xlane.xlu0 %969 }
0x10d7   :  { %v2235_v12 = vpop.eup %2234 }
0x10d8   :  { %659 = vadd.xlane.f32.xlu1 %v2235_v12 }
0x10d9   :  { %v357_v37 = vpop.xlane.xlu0 %356 }
0x10db   :  { %v2237_v25 = vpop.eup %2236 }
0x10dc   :  { %1279 = vadd.xlane.f32.xlu1 %v2237_v25 }
0x10dd   :  { %v977_v42 = vpop.xlane.xlu0 %976 }
0x10e0   :  { %666 = vadd.xlane.f32.xlu1 %v2523_v9 }
0x1154   :  { %v1269_v13 = vpop.xlane.xlu1 %1268 }
0x1155   :  { %v1270_v15 = vcvt.f32.s32 %v1269_v13 }
0x1157   :  { %v1273_v18 = vadd.s32 %v1272_v14, %v1270_v15 }
0x1159   :  { %v1290_v19 = vcvt.s32.f32 %v1273_v18  ;;  %vm1284_vm2 = vcmp.eq.s32.totalorder %v2454_v24, %v1273_v18 }
0x115a   :  { %v1285_v3 = vsel %vm1284_vm2, %v1251_v46, 0.0 }
0x115b   :  { %v1291_v21 = vmul.f32 0.2, %v1290_v19  ;;  %1286 = vadd.xlane.f32.xlu1 %v1285_v3 }
0x115d   :  { %v1292_v22 = vadd.f32 -1.0, %v1291_v21 }
0x115f   :  { %v1293_v16 = vadd.f32 0.1, %v1292_v22 }
0x1161   :  { %v1295_v28 = vsel %vm1294_vm3, %v1293_v16, 0.0 }
0x1162   :  { %v1296_v17 = vadd.f32 %v1295_v28, %v2579_v8 }
0x1165   :  { %v660_v9 = vpop.xlane.xlu1 %659 }
0x1166   :  { %2238 = vlog2.f32 %v660_v9 }
0x1167   :  { %2240 = vlog2.f32 %v350_v1 }
0x1168   :  { %2242 = vlog2.f32 %v970_v23 }
0x1169   :  { %v1280_v26 = vpop.xlane.xlu1 %1279 }
0x116a   :  { %2244 = vlog2.f32 %v1280_v26 }
0x116d   :  { %v667_v8 = vpop.xlane.xlu1 %666 }
0x1170   :  { %v2239_v27 = vpop.eup %2238 }
0x1171   :  { %v2241_v29 = vpop.eup %2240  ;;  %v662_v30 = vmul.f32 0.6931472, %v2239_v27 }
0x1172   :  { %v352_v31 = vmul.f32 0.6931472, %v2241_v29  ;;  %v2243_v32 = vpop.eup %2242 }
0x1173   :  { %v663_v33 = vadd.f32 %v662_v30, %v655_v55  ;;  %v972_v34 = vmul.f32 0.6931472, %v2243_v32 }
0x1174   :  { %v353_v35 = vadd.f32 %v352_v31, %v2597_v52  ;;  %v2245_v36 = vpop.eup %2244 }
0x1175   :  { %v668_v38 = vsub.f32 %v667_v8, %v663_v33  ;;  %v973_v47 = vadd.f32 %v972_v34, %v2601_v57  ;;  %v1282_v40 = vmul.f32 0.6931472, %v2245_v36 }
0x1176   :  { %v358_v39 = vsub.f32 %v357_v37, %v353_v35 }
0x1177   :  { %v978_v43 = vsub.f32 %v977_v42, %v973_v47  ;;  %v1283_v44 = vadd.f32 %v1282_v40, %v1275_v7 }
0x1178   :  { %v669_v41 = vadd.f32 %v668_v38, %v358_v39 }
0x117a   :  { %v979_v46 = vadd.f32 %v978_v43, %v669_v41 }
0x11e8   :  { %v1287_v45 = vpop.xlane.xlu1 %1286 }
0x11e9   :  { %v1288_v48 = vsub.f32 %v1287_v45, %v1283_v44 }
0x11eb   :  { %v1289_v49 = vadd.f32 %v1288_v48, %v979_v46 }
0x11ed   :  { %v1298_v0 = vsel %vm1297_vm4, %v1289_v49, 0.0 }
0x11ee   :  { %v1299_v50 = vadd.f32 %v1298_v0, %v1296_v17 }
0x11f0   :  { %1300 = vst [vmem:[%s2624_s5] sm:$0xff] %v1299_v50 }
0x11f1   :  { %1305 = vsyncpa [#allocation3], 1 }
0x11f2   :  { %1306 = vsyncpa [#allocation5], 1 }

</bundles_post_ra>
